<compile_context>
chip_gen: v7x
topology: tpu7x:2x2x1
jax: 0.10.0
libtpu: 0.0.40
codegen_flags: <defaults>
</compile_context>

<pallas_src>
import functools

import jax
import jax.numpy as jnp
from jax.experimental import pallas as pl
from jax.experimental.pallas import tpu as pltpu


# ---------------------------------------------------------------------------
# Pallas kernel: all transformer layers, grid over depth, x1 resident in VMEM.
# ---------------------------------------------------------------------------
def _transformer_kernel(
    x1_ref, x2_ref,                 # (B*N1, D), (B*N2, D)
    vecd_ref,                       # (8, D): n1w,n1b,n2w,n2b,bo,fnw,fnb,b2
    b1_ref,                         # (1, mlp_dim)
    wq_ref, wkv_ref, wo_ref,        # (D, inner), (D, 2*inner), (inner, D)
    w1_ref, w2_ref,                 # (D, mlp_dim), (mlp_dim, D)
    out_ref,                        # (B*N1, D)
    x_acc,                          # VMEM scratch (B*N1, D) f32 -- carried x1
    *, B, N1, N2, heads, dim_head, eps,
):
    inner = heads * dim_head
    scale = dim_head ** -0.5
    d = pl.program_id(0)

    @pl.when(d == 0)
    def _init():
        x_acc[...] = x1_ref[...].astype(jnp.float32)

    def layer_norm(x, w, b):
        mu = jnp.mean(x, axis=-1, keepdims=True)
        var = jnp.mean(jnp.square(x - mu), axis=-1, keepdims=True)
        return (x - mu) * jax.lax.rsqrt(var + eps) * w + b

    vecs = vecd_ref[...]                          # (8, D)
    n1w, n1b = vecs[0:1], vecs[1:2]
    n2w, n2b = vecs[2:3], vecs[3:4]
    bo = vecs[4:5]
    fnw, fnb = vecs[5:6], vecs[6:7]
    b2 = vecs[7:8]
    b1 = b1_ref[...]                              # (1, mlp_dim)

    x1 = x_acc[...]                               # (B*N1, D) f32
    x2 = x2_ref[...].astype(jnp.float32)          # (B*N2, D)

    # --- PreNorm2in ---
    xn1 = layer_norm(x1, n1w, n1b)
    xn2 = layer_norm(x2, n2w, n2b)

    # --- vitAttention ---
    q = jnp.dot(xn1, wq_ref[...], preferred_element_type=jnp.float32) * scale  # (B*N1, inner)
    kv = jnp.dot(xn2, wkv_ref[...], preferred_element_type=jnp.float32)        # (B*N2, 2*inner)
    wo = wo_ref[...]                                                            # (inner, D)

    ao = jnp.zeros((B * N1, x1.shape[-1]), jnp.float32)
    for h in range(heads):  # static unroll; accumulate through W_o (no concat)
        sl = slice(h * dim_head, (h + 1) * dim_head)
        qh = q[:, sl].reshape(B, N1, dim_head)
        kh = kv[:, sl].reshape(B, N2, dim_head)
        vh = kv[:, inner + h * dim_head: inner + (h + 1) * dim_head].reshape(B, N2, dim_head)

        dots = jnp.einsum("bqd,bkd->bqk", qh, kh,
                          preferred_element_type=jnp.float32)                   # (B, N1, N2)
        m = jnp.max(dots, axis=-1, keepdims=True)
        e = jnp.exp(dots - m)
        attn = e * pl.reciprocal(1.0 + jnp.sum(e, axis=-1, keepdims=True), approx=True)

        oh = jnp.einsum("bqk,bkd->bqd", attn, vh,
                        preferred_element_type=jnp.float32)                     # (B, N1, dh)
        ao = ao + jnp.dot(oh.reshape(B * N1, dim_head), wo[sl, :],
                          preferred_element_type=jnp.float32)

    # residual 1 (to_out bias added once)
    x1 = x1 + ao + bo

    # --- PreNorm + FeedForward ---
    xn = layer_norm(x1, fnw, fnb)
    hdn = jnp.maximum(
        jnp.dot(xn, w1_ref[...], preferred_element_type=jnp.float32) + b1, 0.0)
    ffo = jnp.dot(hdn, w2_ref[...], preferred_element_type=jnp.float32) + b2

    # residual 2 -> carry to next layer
    x_new = x1 + ffo
    x_acc[...] = x_new

    @pl.when(d == pl.num_programs(0) - 1)
    def _finalize():
        out_ref[...] = x_new.astype(out_ref.dtype)


# ---------------------------------------------------------------------------
# Wrapper: one pallas_call for the whole transformer (grid over depth).
# ---------------------------------------------------------------------------
def transformer_forward(x1, x2, layer_params, heads, dim_head):
    B, N1, D = x1.shape
    _, N2, _ = x2.shape
    depth = len(layer_params)
    inner = heads * dim_head
    mlp_dim = layer_params[0]["w1"].shape[-1]

    def stack(name):
        return jnp.stack([p[name] for p in layer_params])

    # Pack all (1, D)-sized vectors into one (depth, 8, D) array.
    vecd = jnp.stack([
        jnp.concatenate([p["n1w"], p["n1b"], p["n2w"], p["n2b"],
                         p["bo"], p["fnw"], p["fnb"], p["b2"]], axis=0)
        for p in layer_params])                                  # (depth, 8, D)
    b1 = stack("b1")                                             # (depth, 1, mlp_dim)
    wq, wkv, wo = stack("wq"), stack("wkv"), stack("wo")
    w1, w2 = stack("w1"), stack("w2")

    # Flatten batch into the matmul M dimension.
    x1f = x1.reshape(B * N1, D)
    x2f = x2.reshape(B * N2, D)

    kernel = functools.partial(
        _transformer_kernel, B=B, N1=N1, N2=N2,
        heads=heads, dim_head=dim_head, eps=1e-5)

    def carried(shape):   # same block every layer (resident / re-used)
        nd = len(shape)
        return pl.BlockSpec(shape, lambda d, _nd=nd: (0,) * _nd)

    def per_layer(shape):  # leading depth axis squeezed away
        nd = len(shape)
        return pl.BlockSpec((None,) + shape, lambda d, _nd=nd: (d,) + (0,) * _nd)

    out = pl.pallas_call(
        kernel,
        out_shape=jax.ShapeDtypeStruct((B * N1, D), x1.dtype),
        grid=(depth,),
        in_specs=[
            carried((B * N1, D)),        # x1
            carried((B * N2, D)),        # x2
            per_layer((8, D)),           # packed LN/bias vectors
            per_layer((1, mlp_dim)),     # b1
            per_layer((D, inner)),       # wq
            per_layer((D, 2 * inner)),   # wkv
            per_layer((inner, D)),       # wo
            per_layer((D, mlp_dim)),     # w1
            per_layer((mlp_dim, D)),     # w2
        ],
        out_specs=carried((B * N1, D)),
        scratch_shapes=[pltpu.VMEM((B * N1, D), jnp.float32)],
        compiler_params=pltpu.CompilerParams(
            dimension_semantics=("arbitrary",)),   # depth carries x1 -> sequential
    )(x1f, x2f, vecd, b1, wq, wkv, wo, w1, w2)

    return out.reshape(B, N1, D)


# ---------------------------------------------------------------------------
# Deterministic synthetic parameter init (matches nn.Module shapes).
# ---------------------------------------------------------------------------
def init_params(key, dim, depth, heads, dim_head, mlp_dim):
    inner = heads * dim_head
    layers = []
    for _ in range(depth):
        key, *ks = jax.random.split(key, 12)
        p = {
            "n1w": (1.0 + 0.1 * jax.random.normal(ks[0], (1, dim))).astype(jnp.float32),
            "n1b": (0.01 * jax.random.normal(ks[1], (1, dim))).astype(jnp.float32),
            "n2w": (1.0 + 0.1 * jax.random.normal(ks[2], (1, dim))).astype(jnp.float32),
            "n2b": (0.01 * jax.random.normal(ks[3], (1, dim))).astype(jnp.float32),
            "wq": (0.02 * jax.random.normal(ks[4], (dim, inner))).astype(jnp.float32),
            "wkv": (0.02 * jax.random.normal(ks[5], (dim, 2 * inner))).astype(jnp.float32),
            "wo": (0.02 * jax.random.normal(ks[6], (inner, dim))).astype(jnp.float32),
            "bo": (0.01 * jax.random.normal(ks[7], (1, dim))).astype(jnp.float32),
            "fnw": (1.0 + 0.1 * jax.random.normal(ks[8], (1, dim))).astype(jnp.float32),
            "fnb": (0.01 * jax.random.normal(ks[9], (1, dim))).astype(jnp.float32),
            "w1": (0.02 * jax.random.normal(ks[10], (dim, mlp_dim))).astype(jnp.float32),
            "b1": jnp.zeros((1, mlp_dim), jnp.float32),
            "w2": (0.02 * jax.random.normal(key, (mlp_dim, dim))).astype(jnp.float32),
            "b2": jnp.zeros((1, dim), jnp.float32),
        }
        layers.append(p)
    return layers


# ---------------------------------------------------------------------------
# Pure-JAX reference (mirrors the PyTorch forward) for a correctness check.
# ---------------------------------------------------------------------------
def reference_forward(x1, x2, layer_params, heads, dim_head, eps=1e-5):
    inner = heads * dim_head
    scale = dim_head ** -0.5

    def ln(x, w, b):
        mu = x.mean(-1, keepdims=True)
        var = ((x - mu) ** 2).mean(-1, keepdims=True)
        return (x - mu) / jnp.sqrt(var + eps) * w + b

    for p in layer_params:
        xn1 = ln(x1, p["n1w"][0], p["n1b"][0])
        xn2 = ln(x2, p["n2w"][0], p["n2b"][0])
        q = xn1 @ p["wq"]
        kv = xn2 @ p["wkv"]
        k, v = kv[..., :inner], kv[..., inner:]
        B, N1, _ = q.shape
        N2 = k.shape[1]
        qh = q.reshape(B, N1, heads, dim_head).transpose(0, 2, 1, 3)
        kh = k.reshape(B, N2, heads, dim_head).transpose(0, 2, 1, 3)
        vh = v.reshape(B, N2, heads, dim_head).transpose(0, 2, 1, 3)
        dots = jnp.einsum("bhnd,bhmd->bhnm", qh, kh) * scale
        m = dots.max(-1, keepdims=True)
        e = jnp.exp(dots - m)
        attn = e / (1.0 + e.sum(-1, keepdims=True))
        o = jnp.einsum("bhnm,bhmd->bhnd", attn, vh).transpose(0, 2, 1, 3).reshape(B, N1, inner)
        x1 = x1 + (o @ p["wo"] + p["bo"][0])
        xn = ln(x1, p["fnw"][0], p["fnb"][0])
        h = jnp.maximum(xn @ p["w1"] + p["b1"][0], 0.0)
        x1 = x1 + (h @ p["w2"] + p["b2"][0])
    return x1


if __name__ == "__main__":
    # Small shapes consistent with the module: dim=32, depth=2, heads=2, dim_head=16
    B, N1, N2 = 2, 8, 16
    DIM, DEPTH, HEADS, DIM_HEAD, MLP_DIM = 32, 2, 2, 16, 64

    key = jax.random.PRNGKey(0)
    k_x1, k_x2, k_p = jax.random.split(key, 3)
    x1 = jax.random.normal(k_x1, (B, N1, DIM), dtype=jnp.float32)
    x2 = jax.random.normal(k_x2, (B, N2, DIM), dtype=jnp.float32)
    layer_params = init_params(k_p, DIM, DEPTH, HEADS, DIM_HEAD, MLP_DIM)

    out = transformer_forward(x1, x2, layer_params, HEADS, DIM_HEAD)
    out = jax.block_until_ready(out)

    ref = reference_forward(x1, x2, layer_params, HEADS, DIM_HEAD)
    assert out.shape == (B, N1, DIM)
    # Tolerance loosened slightly vs the all-exact version because the softmax_one
    # denominator uses pl.reciprocal(approx=True).
    assert jnp.allclose(out, ref, rtol=2e-3, atol=2e-3), "mismatch vs reference"

    print("KERNEL_OK")
</pallas_src>

<mosaic_0001>
module attributes {stable_mosaic.version = 11 : i64} {
  func.func @_transformer_kernel(%arg0: i32, %arg1: memref<16x32xf32, #tpu.memory_space<vmem>>, %arg2: memref<32x32xf32, #tpu.memory_space<vmem>>, %arg3: memref<1x8x32xf32, #tpu.memory_space<vmem>>, %arg4: memref<1x1x64xf32, #tpu.memory_space<vmem>>, %arg5: memref<1x32x32xf32, #tpu.memory_space<vmem>>, %arg6: memref<1x32x64xf32, #tpu.memory_space<vmem>>, %arg7: memref<1x32x32xf32, #tpu.memory_space<vmem>>, %arg8: memref<1x32x64xf32, #tpu.memory_space<vmem>>, %arg9: memref<1x64x32xf32, #tpu.memory_space<vmem>>, %arg10: memref<16x32xf32, #tpu.memory_space<vmem>>, %arg11: memref<16x32xf32, #tpu.memory_space<vmem>>) attributes {dimension_semantics = [#tpu.dimension_semantics<arbitrary>], iteration_bounds = array<i64: 2>, scalar_prefetch = 0 : i64, scratch_operands = 1 : i64, tpu.core_type = #tpu.core_type<tc>, window_params = [{pipeline_mode = #tpu.pipeline_mode<synchronous>, transform_indices = @transform_0, window_bounds = array<i64: 16, 32>}, {pipeline_mode = #tpu.pipeline_mode<synchronous>, transform_indices = @transform_1, window_bounds = array<i64: 32, 32>}, {transform_indices = @transform_2, window_bounds = array<i64: 1, 8, 32>}, {transform_indices = @transform_3, window_bounds = array<i64: 1, 1, 64>}, {transform_indices = @transform_4, window_bounds = array<i64: 1, 32, 32>}, {transform_indices = @transform_5, window_bounds = array<i64: 1, 32, 64>}, {transform_indices = @transform_6, window_bounds = array<i64: 1, 32, 32>}, {transform_indices = @transform_7, window_bounds = array<i64: 1, 32, 64>}, {transform_indices = @transform_8, window_bounds = array<i64: 1, 64, 32>}, {pipeline_mode = #tpu.pipeline_mode<synchronous>, transform_indices = @transform_9, window_bounds = array<i64: 16, 32>}]} {
    %c0_i32 = arith.constant 0 : i32
    %0 = arith.cmpi eq, %arg0, %c0_i32 : i32
    %1 = arith.extui %0 : i1 to i32
    %c0_i32_0 = arith.constant 0 : i32
    %2 = arith.cmpi ne, %1, %c0_i32_0 : i32
    scf.if %2 {
      %c0_61 = arith.constant 0 : index
      %c0_62 = arith.constant 0 : index
      %162 = vector.load %arg1[%c0_61, %c0_62] : memref<16x32xf32, #tpu.memory_space<vmem>>, vector<16x32xf32>
      %c0_63 = arith.constant 0 : index
      %c0_64 = arith.constant 0 : index
      %163 = vector.load %arg11[%c0_63, %c0_64] : memref<16x32xf32, #tpu.memory_space<vmem>>, vector<16x32xf32>
      tpu.vector_store %arg11[%c0_63, %c0_64], %162 {strides = array<i32>} : memref<16x32xf32, #tpu.memory_space<vmem>>, vector<16x32xf32>,
    } else {
    }
    %c0 = arith.constant 0 : index
    %c0_1 = arith.constant 0 : index
    %c0_2 = arith.constant 0 : index
    %3 = vector.load %arg3[%c0, %c0_1, %c0_2] : memref<1x8x32xf32, #tpu.memory_space<vmem>>, vector<1x8x32xf32>
    %4 = vector.shape_cast %3 : vector<1x8x32xf32> to vector<8x32xf32>
    %5 = vector.extract_strided_slice %4 {offsets = [0, 0], sizes = [1, 32], strides = [1, 1]} : vector<8x32xf32> to vector<1x32xf32>
    %6 = vector.extract_strided_slice %4 {offsets = [1, 0], sizes = [1, 32], strides = [1, 1]} : vector<8x32xf32> to vector<1x32xf32>
    %7 = vector.extract_strided_slice %4 {offsets = [2, 0], sizes = [1, 32], strides = [1, 1]} : vector<8x32xf32> to vector<1x32xf32>
    %8 = vector.extract_strided_slice %4 {offsets = [3, 0], sizes = [1, 32], strides = [1, 1]} : vector<8x32xf32> to vector<1x32xf32>
    %9 = vector.extract_strided_slice %4 {offsets = [4, 0], sizes = [1, 32], strides = [1, 1]} : vector<8x32xf32> to vector<1x32xf32>
    %10 = vector.extract_strided_slice %4 {offsets = [5, 0], sizes = [1, 32], strides = [1, 1]} : vector<8x32xf32> to vector<1x32xf32>
    %11 = vector.extract_strided_slice %4 {offsets = [6, 0], sizes = [1, 32], strides = [1, 1]} : vector<8x32xf32> to vector<1x32xf32>
    %12 = vector.extract_strided_slice %4 {offsets = [7, 0], sizes = [1, 32], strides = [1, 1]} : vector<8x32xf32> to vector<1x32xf32>
    %c0_3 = arith.constant 0 : index
    %c0_4 = arith.constant 0 : index
    %c0_5 = arith.constant 0 : index
    %13 = vector.load %arg4[%c0_3, %c0_4, %c0_5] : memref<1x1x64xf32, #tpu.memory_space<vmem>>, vector<1x1x64xf32>
    %14 = vector.shape_cast %13 : vector<1x1x64xf32> to vector<1x64xf32>
    %c0_6 = arith.constant 0 : index
    %c0_7 = arith.constant 0 : index
    %15 = vector.load %arg11[%c0_6, %c0_7] : memref<16x32xf32, #tpu.memory_space<vmem>>, vector<16x32xf32>
    %c0_8 = arith.constant 0 : index
    %c0_9 = arith.constant 0 : index
    %16 = vector.load %arg2[%c0_8, %c0_9] : memref<32x32xf32, #tpu.memory_space<vmem>>, vector<32x32xf32>
    %cst = arith.constant dense<0.000000e+00> : vector<16xf32>
    %17 = vector.multi_reduction <add>, %15, %cst [1] : vector<16x32xf32> to vector<16xf32>
    %18 = vector.shape_cast %17 : vector<16xf32> to vector<16x1xf32>
    %cst_10 = arith.constant 3.200000e+01 : f32
    %19 = vector.broadcast %cst_10 : f32 to vector<16x1xf32>
    %20 = arith.divf %18, %19 : vector<16x1xf32>
    %21 = vector.broadcast %20 : vector<16x1xf32> to vector<16x32xf32>
    %22 = arith.subf %15, %21 : vector<16x32xf32>
    %23 = arith.mulf %22, %22 : vector<16x32xf32>
    %cst_11 = arith.constant dense<0.000000e+00> : vector<16xf32>
    %24 = vector.multi_reduction <add>, %23, %cst_11 [1] : vector<16x32xf32> to vector<16xf32>
    %25 = vector.shape_cast %24 : vector<16xf32> to vector<16x1xf32>
    %cst_12 = arith.constant 3.200000e+01 : f32
    %26 = vector.broadcast %cst_12 : f32 to vector<16x1xf32>
    %27 = arith.divf %25, %26 : vector<16x1xf32>
    %28 = vector.broadcast %20 : vector<16x1xf32> to vector<16x32xf32>
    %29 = arith.subf %15, %28 : vector<16x32xf32>
    %cst_13 = arith.constant 9.99999974E-6 : f32
    %30 = vector.broadcast %cst_13 : f32 to vector<16x1xf32>
    %31 = arith.addf %27, %30 : vector<16x1xf32>
    %32 = math.rsqrt %31 : vector<16x1xf32>
    %33 = vector.broadcast %32 : vector<16x1xf32> to vector<16x32xf32>
    %34 = arith.mulf %29, %33 : vector<16x32xf32>
    %35 = vector.broadcast %5 : vector<1x32xf32> to vector<16x32xf32>
    %36 = arith.mulf %34, %35 : vector<16x32xf32>
    %37 = vector.broadcast %6 : vector<1x32xf32> to vector<16x32xf32>
    %38 = arith.addf %36, %37 : vector<16x32xf32>
    %cst_14 = arith.constant dense<0.000000e+00> : vector<32xf32>
    %39 = vector.multi_reduction <add>, %16, %cst_14 [1] : vector<32x32xf32> to vector<32xf32>
    %40 = vector.shape_cast %39 : vector<32xf32> to vector<32x1xf32>
    %cst_15 = arith.constant 3.200000e+01 : f32
    %41 = vector.broadcast %cst_15 : f32 to vector<32x1xf32>
    %42 = arith.divf %40, %41 : vector<32x1xf32>
    %43 = vector.broadcast %42 : vector<32x1xf32> to vector<32x32xf32>
    %44 = arith.subf %16, %43 : vector<32x32xf32>
    %45 = arith.mulf %44, %44 : vector<32x32xf32>
    %cst_16 = arith.constant dense<0.000000e+00> : vector<32xf32>
    %46 = vector.multi_reduction <add>, %45, %cst_16 [1] : vector<32x32xf32> to vector<32xf32>
    %47 = vector.shape_cast %46 : vector<32xf32> to vector<32x1xf32>
    %cst_17 = arith.constant 3.200000e+01 : f32
    %48 = vector.broadcast %cst_17 : f32 to vector<32x1xf32>
    %49 = arith.divf %47, %48 : vector<32x1xf32>
    %50 = vector.broadcast %42 : vector<32x1xf32> to vector<32x32xf32>
    %51 = arith.subf %16, %50 : vector<32x32xf32>
    %cst_18 = arith.constant 9.99999974E-6 : f32
    %52 = vector.broadcast %cst_18 : f32 to vector<32x1xf32>
    %53 = arith.addf %49, %52 : vector<32x1xf32>
    %54 = math.rsqrt %53 : vector<32x1xf32>
    %55 = vector.broadcast %54 : vector<32x1xf32> to vector<32x32xf32>
    %56 = arith.mulf %51, %55 : vector<32x32xf32>
    %57 = vector.broadcast %7 : vector<1x32xf32> to vector<32x32xf32>
    %58 = arith.mulf %56, %57 : vector<32x32xf32>
    %59 = vector.broadcast %8 : vector<1x32xf32> to vector<32x32xf32>
    %60 = arith.addf %58, %59 : vector<32x32xf32>
    %c0_19 = arith.constant 0 : index
    %c0_20 = arith.constant 0 : index
    %c0_21 = arith.constant 0 : index
    %61 = vector.load %arg5[%c0_19, %c0_20, %c0_21] : memref<1x32x32xf32, #tpu.memory_space<vmem>>, vector<1x32x32xf32>
    %62 = vector.shape_cast %61 : vector<1x32x32xf32> to vector<32x32xf32>
    %cst_22 = arith.constant dense<0.000000e+00> : vector<16x32xf32>
    %63 = tpu.matmul %38, %62, %cst_22 {dimension_numbers = #tpu.dot_dimension_numbers<[1], [0], [0], [1], [0, 0, 1, 1], [], []>} : vector<16x32xf32>, vector<32x32xf32>, vector<16x32xf32> -> vector<16x32xf32>
    %cst_23 = arith.constant 2.500000e-01 : f32
    %64 = vector.broadcast %cst_23 : f32 to vector<16x32xf32>
    %65 = arith.mulf %63, %64 : vector<16x32xf32>
    %c0_24 = arith.constant 0 : index
    %c0_25 = arith.constant 0 : index
    %c0_26 = arith.constant 0 : index
    %66 = vector.load %arg6[%c0_24, %c0_25, %c0_26] : memref<1x32x64xf32, #tpu.memory_space<vmem>>, vector<1x32x64xf32>
    %67 = vector.shape_cast %66 : vector<1x32x64xf32> to vector<32x64xf32>
    %cst_27 = arith.constant dense<0.000000e+00> : vector<32x64xf32>
    %68 = tpu.matmul %60, %67, %cst_27 {dimension_numbers = #tpu.dot_dimension_numbers<[1], [0], [0], [1], [0, 0, 1, 1], [], []>} : vector<32x32xf32>, vector<32x64xf32>, vector<32x64xf32> -> vector<32x64xf32>
    %c0_28 = arith.constant 0 : index
    %c0_29 = arith.constant 0 : index
    %c0_30 = arith.constant 0 : index
    %69 = vector.load %arg7[%c0_28, %c0_29, %c0_30] : memref<1x32x32xf32, #tpu.memory_space<vmem>>, vector<1x32x32xf32>
    %70 = vector.shape_cast %69 : vector<1x32x32xf32> to vector<32x32xf32>
    %cst_31 = arith.constant 0.000000e+00 : f32
    %71 = vector.broadcast %cst_31 : f32 to vector<16x32xf32>
    %72 = vector.extract_strided_slice %65 {offsets = [0, 0], sizes = [16, 16], strides = [1, 1]} : vector<16x32xf32> to vector<16x16xf32>
    %73 = vector.shape_cast %72 : vector<16x16xf32> to vector<2x8x16xf32>
    %74 = vector.extract_strided_slice %68 {offsets = [0, 0], sizes = [32, 16], strides = [1, 1]} : vector<32x64xf32> to vector<32x16xf32>
    %75 = vector.shape_cast %74 : vector<32x16xf32> to vector<2x16x16xf32>
    %76 = vector.extract_strided_slice %68 {offsets = [0, 32], sizes = [32, 16], strides = [1, 1]} : vector<32x64xf32> to vector<32x16xf32>
    %77 = vector.shape_cast %76 : vector<32x16xf32> to vector<2x16x16xf32>
    "tpu.trace_start"() <{level = 10 : i32, message = "bqd,bkd->bqk"}> : () -> ()
    %cst_32 = arith.constant dense<0.000000e+00> : vector<2x8x16xf32>
    %78 = tpu.matmul %73, %75, %cst_32 {dimension_numbers = #tpu.dot_dimension_numbers<[2], [2], [1], [1], [0, 0, 0, 1, 1, 1], [0], [0]>} : vector<2x8x16xf32>, vector<2x16x16xf32>, vector<2x8x16xf32> -> vector<2x8x16xf32>
    "tpu.trace_stop"() : () -> ()
    %cst_33 = arith.constant dense<0xFF800000> : vector<2x8xf32>
    %79 = vector.multi_reduction <maximumf>, %78, %cst_33 [2] : vector<2x8x16xf32> to vector<2x8xf32>
    %80 = vector.shape_cast %79 : vector<2x8xf32> to vector<2x8x1xf32>
    %81 = vector.broadcast %80 : vector<2x8x1xf32> to vector<2x8x16xf32>
    %82 = arith.subf %78, %81 : vector<2x8x16xf32>
    %83 = math.exp %82 : vector<2x8x16xf32>
    %cst_34 = arith.constant dense<0.000000e+00> : vector<2x8xf32>
    %84 = vector.multi_reduction <add>, %83, %cst_34 [2] : vector<2x8x16xf32> to vector<2x8xf32>
    %85 = vector.shape_cast %84 : vector<2x8xf32> to vector<2x8x1xf32>
    %cst_35 = arith.constant 1.000000e+00 : f32
    %86 = vector.broadcast %cst_35 : f32 to vector<2x8x1xf32>
    %87 = arith.addf %86, %85 : vector<2x8x1xf32>
    %88 = tpu.reciprocal %87 {approx = true} : vector<2x8x1xf32> -> vector<2x8x1xf32>
    %89 = vector.broadcast %88 : vector<2x8x1xf32> to vector<2x8x16xf32>
    %90 = arith.mulf %83, %89 : vector<2x8x16xf32>
    "tpu.trace_start"() <{level = 10 : i32, message = "bqk,bkd->bqd"}> : () -> ()
    %cst_36 = arith.constant dense<0.000000e+00> : vector<2x8x16xf32>
    %91 = tpu.matmul %90, %77, %cst_36 {dimension_numbers = #tpu.dot_dimension_numbers<[2], [1], [1], [2], [0, 0, 0, 1, 1, 2], [0], [0]>} : vector<2x8x16xf32>, vector<2x16x16xf32>, vector<2x8x16xf32> -> vector<2x8x16xf32>
    "tpu.trace_stop"() : () -> ()
    %92 = vector.shape_cast %91 : vector<2x8x16xf32> to vector<16x16xf32>
    %93 = vector.extract_strided_slice %70 {offsets = [0, 0], sizes = [16, 32], strides = [1, 1]} : vector<32x32xf32> to vector<16x32xf32>
    %cst_37 = arith.constant dense<0.000000e+00> : vector<16x32xf32>
    %94 = tpu.matmul %92, %93, %cst_37 {dimension_numbers = #tpu.dot_dimension_numbers<[1], [0], [0], [1], [0, 0, 1, 1], [], []>} : vector<16x16xf32>, vector<16x32xf32>, vector<16x32xf32> -> vector<16x32xf32>
    %95 = arith.addf %71, %94 : vector<16x32xf32>
    %96 = vector.extract_strided_slice %65 {offsets = [0, 16], sizes = [16, 16], strides = [1, 1]} : vector<16x32xf32> to vector<16x16xf32>
    %97 = vector.shape_cast %96 : vector<16x16xf32> to vector<2x8x16xf32>
    %98 = vector.extract_strided_slice %68 {offsets = [0, 16], sizes = [32, 16], strides = [1, 1]} : vector<32x64xf32> to vector<32x16xf32>
    %99 = vector.shape_cast %98 : vector<32x16xf32> to vector<2x16x16xf32>
    %100 = vector.extract_strided_slice %68 {offsets = [0, 48], sizes = [32, 16], strides = [1, 1]} : vector<32x64xf32> to vector<32x16xf32>
    %101 = vector.shape_cast %100 : vector<32x16xf32> to vector<2x16x16xf32>
    "tpu.trace_start"() <{level = 10 : i32, message = "bqd,bkd->bqk"}> : () -> ()
    %cst_38 = arith.constant dense<0.000000e+00> : vector<2x8x16xf32>
    %102 = tpu.matmul %97, %99, %cst_38 {dimension_numbers = #tpu.dot_dimension_numbers<[2], [2], [1], [1], [0, 0, 0, 1, 1, 1], [0], [0]>} : vector<2x8x16xf32>, vector<2x16x16xf32>, vector<2x8x16xf32> -> vector<2x8x16xf32>
    "tpu.trace_stop"() : () -> ()
    %cst_39 = arith.constant dense<0xFF800000> : vector<2x8xf32>
    %103 = vector.multi_reduction <maximumf>, %102, %cst_39 [2] : vector<2x8x16xf32> to vector<2x8xf32>
    %104 = vector.shape_cast %103 : vector<2x8xf32> to vector<2x8x1xf32>
    %105 = vector.broadcast %104 : vector<2x8x1xf32> to vector<2x8x16xf32>
    %106 = arith.subf %102, %105 : vector<2x8x16xf32>
    %107 = math.exp %106 : vector<2x8x16xf32>
    %cst_40 = arith.constant dense<0.000000e+00> : vector<2x8xf32>
    %108 = vector.multi_reduction <add>, %107, %cst_40 [2] : vector<2x8x16xf32> to vector<2x8xf32>
    %109 = vector.shape_cast %108 : vector<2x8xf32> to vector<2x8x1xf32>
    %cst_41 = arith.constant 1.000000e+00 : f32
    %110 = vector.broadcast %cst_41 : f32 to vector<2x8x1xf32>
    %111 = arith.addf %110, %109 : vector<2x8x1xf32>
    %112 = tpu.reciprocal %111 {approx = true} : vector<2x8x1xf32> -> vector<2x8x1xf32>
    %113 = vector.broadcast %112 : vector<2x8x1xf32> to vector<2x8x16xf32>
    %114 = arith.mulf %107, %113 : vector<2x8x16xf32>
    "tpu.trace_start"() <{level = 10 : i32, message = "bqk,bkd->bqd"}> : () -> ()
    %cst_42 = arith.constant dense<0.000000e+00> : vector<2x8x16xf32>
    %115 = tpu.matmul %114, %101, %cst_42 {dimension_numbers = #tpu.dot_dimension_numbers<[2], [1], [1], [2], [0, 0, 0, 1, 1, 2], [0], [0]>} : vector<2x8x16xf32>, vector<2x16x16xf32>, vector<2x8x16xf32> -> vector<2x8x16xf32>
    "tpu.trace_stop"() : () -> ()
    %116 = vector.shape_cast %115 : vector<2x8x16xf32> to vector<16x16xf32>
    %117 = vector.extract_strided_slice %70 {offsets = [16, 0], sizes = [16, 32], strides = [1, 1]} : vector<32x32xf32> to vector<16x32xf32>
    %cst_43 = arith.constant dense<0.000000e+00> : vector<16x32xf32>
    %118 = tpu.matmul %116, %117, %cst_43 {dimension_numbers = #tpu.dot_dimension_numbers<[1], [0], [0], [1], [0, 0, 1, 1], [], []>} : vector<16x16xf32>, vector<16x32xf32>, vector<16x32xf32> -> vector<16x32xf32>
    %119 = arith.addf %95, %118 : vector<16x32xf32>
    %120 = arith.addf %15, %119 : vector<16x32xf32>
    %121 = vector.broadcast %9 : vector<1x32xf32> to vector<16x32xf32>
    %122 = arith.addf %120, %121 : vector<16x32xf32>
    %cst_44 = arith.constant dense<0.000000e+00> : vector<16xf32>
    %123 = vector.multi_reduction <add>, %122, %cst_44 [1] : vector<16x32xf32> to vector<16xf32>
    %124 = vector.shape_cast %123 : vector<16xf32> to vector<16x1xf32>
    %cst_45 = arith.constant 3.200000e+01 : f32
    %125 = vector.broadcast %cst_45 : f32 to vector<16x1xf32>
    %126 = arith.divf %124, %125 : vector<16x1xf32>
    %127 = vector.broadcast %126 : vector<16x1xf32> to vector<16x32xf32>
    %128 = arith.subf %122, %127 : vector<16x32xf32>
    %129 = arith.mulf %128, %128 : vector<16x32xf32>
    %cst_46 = arith.constant dense<0.000000e+00> : vector<16xf32>
    %130 = vector.multi_reduction <add>, %129, %cst_46 [1] : vector<16x32xf32> to vector<16xf32>
    %131 = vector.shape_cast %130 : vector<16xf32> to vector<16x1xf32>
    %cst_47 = arith.constant 3.200000e+01 : f32
    %132 = vector.broadcast %cst_47 : f32 to vector<16x1xf32>
    %133 = arith.divf %131, %132 : vector<16x1xf32>
    %134 = vector.broadcast %126 : vector<16x1xf32> to vector<16x32xf32>
    %135 = arith.subf %122, %134 : vector<16x32xf32>
    %cst_48 = arith.constant 9.99999974E-6 : f32
    %136 = vector.broadcast %cst_48 : f32 to vector<16x1xf32>
    %137 = arith.addf %133, %136 : vector<16x1xf32>
    %138 = math.rsqrt %137 : vector<16x1xf32>
    %139 = vector.broadcast %138 : vector<16x1xf32> to vector<16x32xf32>
    %140 = arith.mulf %135, %139 : vector<16x32xf32>
    %141 = vector.broadcast %10 : vector<1x32xf32> to vector<16x32xf32>
    %142 = arith.mulf %140, %141 : vector<16x32xf32>
    %143 = vector.broadcast %11 : vector<1x32xf32> to vector<16x32xf32>
    %144 = arith.addf %142, %143 : vector<16x32xf32>
    %c0_49 = arith.constant 0 : index
    %c0_50 = arith.constant 0 : index
    %c0_51 = arith.constant 0 : index
    %145 = vector.load %arg8[%c0_49, %c0_50, %c0_51] : memref<1x32x64xf32, #tpu.memory_space<vmem>>, vector<1x32x64xf32>
    %146 = vector.shape_cast %145 : vector<1x32x64xf32> to vector<32x64xf32>
    %cst_52 = arith.constant dense<0.000000e+00> : vector<16x64xf32>
    %147 = tpu.matmul %144, %146, %cst_52 {dimension_numbers = #tpu.dot_dimension_numbers<[1], [0], [0], [1], [0, 0, 1, 1], [], []>} : vector<16x32xf32>, vector<32x64xf32>, vector<16x64xf32> -> vector<16x64xf32>
    %148 = vector.broadcast %14 : vector<1x64xf32> to vector<16x64xf32>
    %149 = arith.addf %147, %148 : vector<16x64xf32>
    %cst_53 = arith.constant 0.000000e+00 : f32
    %150 = vector.broadcast %cst_53 : f32 to vector<16x64xf32>
    %151 = arith.maximumf %149, %150 : vector<16x64xf32>
    %c0_54 = arith.constant 0 : index
    %c0_55 = arith.constant 0 : index
    %c0_56 = arith.constant 0 : index
    %152 = vector.load %arg9[%c0_54, %c0_55, %c0_56] : memref<1x64x32xf32, #tpu.memory_space<vmem>>, vector<1x64x32xf32>
    %153 = vector.shape_cast %152 : vector<1x64x32xf32> to vector<64x32xf32>
    %cst_57 = arith.constant dense<0.000000e+00> : vector<16x32xf32>
    %154 = tpu.matmul %151, %153, %cst_57 {dimension_numbers = #tpu.dot_dimension_numbers<[1], [0], [0], [1], [0, 0, 1, 1], [], []>} : vector<16x64xf32>, vector<64x32xf32>, vector<16x32xf32> -> vector<16x32xf32>
    %155 = vector.broadcast %12 : vector<1x32xf32> to vector<16x32xf32>
    %156 = arith.addf %154, %155 : vector<16x32xf32>
    %157 = arith.addf %122, %156 : vector<16x32xf32>
    %c0_58 = arith.constant 0 : index
    %c0_59 = arith.constant 0 : index
    %158 = vector.load %arg11[%c0_58, %c0_59] : memref<16x32xf32, #tpu.memory_space<vmem>>, vector<16x32xf32>
    tpu.vector_store %arg11[%c0_58, %c0_59], %157 {strides = array<i32>} : memref<16x32xf32, #tpu.memory_space<vmem>>, vector<16x32xf32>,
    %c1_i32 = arith.constant 1 : i32
    %159 = arith.cmpi eq, %arg0, %c1_i32 : i32
    %160 = arith.extui %159 : i1 to i32
    %c0_i32_60 = arith.constant 0 : i32
    %161 = arith.cmpi ne, %160, %c0_i32_60 : i32
    scf.if %161 {
      %c0_61 = arith.constant 0 : index
      %c0_62 = arith.constant 0 : index
      %162 = vector.load %arg10[%c0_61, %c0_62] : memref<16x32xf32, #tpu.memory_space<vmem>>, vector<16x32xf32>
      tpu.vector_store %arg10[%c0_61, %c0_62], %157 {strides = array<i32>} : memref<16x32xf32, #tpu.memory_space<vmem>>, vector<16x32xf32>,
    } else {
    }
    return
  }
  func.func @transform_0(%arg0: i32) -> (i32, i32) {
    %c0_i32 = arith.constant 0 : i32
    %c0_i32_0 = arith.constant 0 : i32
    %c0_i32_1 = arith.constant 0 : i32
    return %c0_i32, %c0_i32_0 : i32, i32
  }
  func.func @transform_1(%arg0: i32) -> (i32, i32) {
    %c0_i32 = arith.constant 0 : i32
    %c0_i32_0 = arith.constant 0 : i32
    %c0_i32_1 = arith.constant 0 : i32
    return %c0_i32, %c0_i32_0 : i32, i32
  }
  func.func @transform_2(%arg0: i32) -> (i32, i32, i32) {
    %c0_i32 = arith.constant 0 : i32
    %c0_i32_0 = arith.constant 0 : i32
    %c0_i32_1 = arith.constant 0 : i32
    return %arg0, %c0_i32, %c0_i32_0 : i32, i32, i32
  }
  func.func @transform_3(%arg0: i32) -> (i32, i32, i32) {
    %c0_i32 = arith.constant 0 : i32
    %c0_i32_0 = arith.constant 0 : i32
    %c0_i32_1 = arith.constant 0 : i32
    return %arg0, %c0_i32, %c0_i32_0 : i32, i32, i32
  }
  func.func @transform_4(%arg0: i32) -> (i32, i32, i32) {
    %c0_i32 = arith.constant 0 : i32
    %c0_i32_0 = arith.constant 0 : i32
    %c0_i32_1 = arith.constant 0 : i32
    return %arg0, %c0_i32, %c0_i32_0 : i32, i32, i32
  }
  func.func @transform_5(%arg0: i32) -> (i32, i32, i32) {
    %c0_i32 = arith.constant 0 : i32
    %c0_i32_0 = arith.constant 0 : i32
    %c0_i32_1 = arith.constant 0 : i32
    return %arg0, %c0_i32, %c0_i32_0 : i32, i32, i32
  }
  func.func @transform_6(%arg0: i32) -> (i32, i32, i32) {
    %c0_i32 = arith.constant 0 : i32
    %c0_i32_0 = arith.constant 0 : i32
    %c0_i32_1 = arith.constant 0 : i32
    return %arg0, %c0_i32, %c0_i32_0 : i32, i32, i32
  }
  func.func @transform_7(%arg0: i32) -> (i32, i32, i32) {
    %c0_i32 = arith.constant 0 : i32
    %c0_i32_0 = arith.constant 0 : i32
    %c0_i32_1 = arith.constant 0 : i32
    return %arg0, %c0_i32, %c0_i32_0 : i32, i32, i32
  }
  func.func @transform_8(%arg0: i32) -> (i32, i32, i32) {
    %c0_i32 = arith.constant 0 : i32
    %c0_i32_0 = arith.constant 0 : i32
    %c0_i32_1 = arith.constant 0 : i32
    return %arg0, %c0_i32, %c0_i32_0 : i32, i32, i32
  }
  func.func @transform_9(%arg0: i32) -> (i32, i32) {
    %c0_i32 = arith.constant 0 : i32
    %c0_i32_0 = arith.constant 0 : i32
    %c0_i32_1 = arith.constant 0 : i32
    return %c0_i32, %c0_i32_0 : i32, i32
  }
}

</mosaic_0001>

<bundles_post_ra>
// kernel: tpu_custom_call.1
= control target key start
LH: loop header
LB: loop body
LE: loop exit
PB: predicated region body
PF: predicated region fallthrough
CT: control target
= control target key end

     0   :  { %s3265_s0 = inlined_call_operand.hbm [shape: f32[16,32], index: 0, kind: input, shape index: {}]   ;;  %s3266_s1 = inlined_call_operand.hbm [shape: f32[32,32], index: 1, kind: input, shape index: {}]   ;;  %s3267_s2 = inlined_call_operand.hbm [shape: f32[2,8,32], index: 2, kind: input, shape index: {}]   ;;  %s3268_s3 = inlined_call_operand.vmem [shape: f32[2,1,64], index: 3, kind: input, shape index: {}]   ;;  %s3269_s4 = inlined_call_operand.vmem [shape: f32[2,32,32], index: 4, kind: input, shape index: {}]   ;;  %s3270_s5 = inlined_call_operand.vmem [shape: f32[2,32,64], index: 5, kind: input, shape index: {}]   ;;  %s3271_s6 = inlined_call_operand.vmem [shape: f32[2,32,32], index: 6, kind: input, shape index: {}]   ;;  %s3272_s7 = inlined_call_operand.hbm [shape: f32[2,32,64], index: 7, kind: input, shape index: {}]   ;;  %s3273_s8 = inlined_call_operand.vmem [shape: f32[2,64,32], index: 8, kind: input, shape index: {}]   ;;  %s3274_s9 = inlined_call_operand.hbm [shape: f32[16,32], index: 9, kind: output, shape index: {}]  }
   0x1   :  { %3289 = sst [smem:[#allocation16_spill]] %s3265_s0 }
   0x2   :  { %3290 = sst [smem:[#allocation17_spill]] %s3274_s9 }
   0x3   :  { %14 = vsyncpa [#allocation4], 0 }
   0x4   :  { %15 = vsyncpa [#allocation7], 0 }
   0x5   :  { %16 = vsyncpa [#allocation5], 0  ;;  %s2787_s30 = smov 0   ;;  %s2789_s10 = smov 0  }
   0x6   :  { %s2791_s11 = smov 0   ;;  %s2793_s12 = smov 0  }
   0x7 LB: > { %s2806_s13 = sadd.s32 4294967295, %s2720_s12   ;;  %p84_p0 = scmp.ne.s32.totalorder %s2712_s10, %s2708_s30  ;;  %s2720_s12 = sphi %s2793_s12, %s3315_s12   ;;  %s2716_s11 = sphi %s2791_s11, %s3318_s11   ;;  %s2712_s10 = sphi %s2789_s10, %s3317_s10   ;;  %s2708_s30 = sphi %s2787_s30, %s3316_s30  }
   0x8   : > { %p3275_p1 = scmp.eq.s32.totalorder %s2806_s13, 0  ;;  %p2059_p2 = scmp.ge.s32.totalorder %s2720_s12, 1 }
   0x9   : > { %p272_p3 = scmp.lt.s32.totalorder %s2720_s12, 3  ;;  %s2722_s16 = smov [#allocation3]  }
   0xa   : > { %p2815_p5 = por %p3275_p1, %p84_p0  ;;  %s284_s17 = sshll.u32 %s2722_s16, 4  ;;  %s285_s17 = int_to_ptr.vmem [resolvable:$true] %s284_s17 }
   0xb   : > { %p2819_p6 = pnand %p2059_p2, %p272_p3  ;;  %s2832_s19 = sadd.s32 1, %s2720_s12  }
   0xc   : > { %s3291_s14 = scalar_select %p2815_p5, 1, 0 }
   0xd   : > { %s3292_s15 = scalar_select %p2819_p6, 1, 0 }
   0xe   : > { %p2404_p7 = pneg %p2819_p6  ;;  %3294 = sst [smem:[#allocation15_spill]] %s2832_s19 }
   0xf   : > { %s71_s20 = sadd.s32 1, %s2716_s11  ;;  %s68_s21 = ssub.s32 %s2720_s12, %s2832_s19 }
  0x10   : > { %p2827_p8 = pnand %p2404_p7, %p3275_p1  ;;  %s3295_s0 = sld [smem:[#allocation16_spill]] }
  0x12   : > { %p3283_p10 = pneg %p2827_p8 }
  0x16   : > { %s2532_s24 = scalar_lea.hbm %s3295_s0, 256 }
  0x17   : > { %p2533_p9 = scmp.ne.s32.totalorder %s3295_s0, %s2532_s24  ;;  %p2539_p13 = scmp.lt.u32.totalorder %s2532_s24, %s3295_s0 }
  0x19   : > { %p2535_p11 = pnand %p3283_p10, %p2533_p9 }
  0x1b   : > { %p2536_p12 = pneg %p2535_p11 }
  0x1d   : > { %p2541_p0 = pnand %p2539_p13, %p2536_p12 }
  0x1f   : > { %2544 = shalt.err (!%p2541_p0)
}
  0x20   : > { %s2545_s29 = scalar_lea.vmem %s285_s17, 256  ;;  %p2553_p4 = scmp.lt.s32.totalorder %s285_s17, %s285_s17 }
  0x21   : > { %p2546_p2 = scmp.ne.s32.totalorder %s285_s17, %s2545_s29  ;;  %p2554_p1 = scmp.lt.s32.totalorder %s2545_s29, %s2545_s29 }
  0x23   : > { %p2548_p3 = pnand %p2546_p2, %p3283_p10  ;;  %p2555_p5 = por %p2554_p1, %p2553_p4 }
  0x25   : > { %p2549_p7 = pneg %p2548_p3 }
  0x27   : > { %p2556_p6 = pnand %p2555_p5, %p2549_p7 }
  0x29   : > { %2559 = shalt.err (!%p2556_p6)
}
  0x2a   : > { %s3281_s30 = smov 128   ;;  %s3284_s16 = smov 8  }
  0x2b   : > { %2407 = dma.hbm_to_vmem [thread:$0]  (!%p2827_p8), %s3295_s0, 256, %s285_s17, [#allocation4], %s3281_s30, %s3281_s30, %s3284_s16  }
  0x2c   : > { %p69_p1 = scmp.eq.s32.totalorder %s68_s21, 0  ;;  %p78_p4 = scmp.ne.s32.totalorder %s2716_s11, %s2712_s10 }
  0x2d   : > { %p79_p5 = scmp.eq.s32.totalorder %s2720_s12, 0  ;;  %p2420_p6 = scmp.lt.s32.totalorder %s2720_s12, 2 }
  0x2e   : > { %s2867_s24 = scalar_select %p69_p1, %s2716_s11, %s71_s20  }
  0x2f   : > { %p80_p9 = por %p79_p5, %p78_p4  ;;  %s311_s25 = sand.u32 1, %s2720_s12  }
  0x30   : > { %s313_s26 = sand.u32 1, %s2716_s11   ;;  %s2064_s28 = sshll.u32 %s2720_s12, 7 }
  0x31   : > { %s2063_s27 = sshll.u32 %s313_s26, 3  ;;  %s2875_s9 = scalar_lea.hbm %s3267_s2, %s2064_s28 }
  0x32   : > { %s315_s17 = scalar_lea.vmem [#allocation8], %s2063_s27  ;;  %p2877_p11 = pnand %p2420_p6, %p80_p9 }
  0x33   : > { %s322_s21 = sshll.u32 %s315_s17, 4  ;;  %s2883_s20 = sshll.u32 %s313_s26, 5  ;;  %s2881_s21 = int_to_ptr.vmem [resolvable:$true] %s322_s21 }
  0x34   : > { %s3296_s22 = scalar_select %p2877_p11, 1, 0 }
  0x35   : > { %s2885_s23 = scalar_lea.sflag [#allocation4], %s311_s25  ;;  %s2560_s19 = scalar_lea.hbm %s2875_s9, 128 }
  0x36   : > { %p2561_p12 = scmp.ne.s32.totalorder %s2875_s9, %s2560_s19  ;;  %p3286_p13 = pneg %p2877_p11 }
  0x37   : > { %s2565_s29 = scalar_lea.hbm %s3267_s2, 256  ;;  %p2566_p3 = scmp.lt.u32.totalorder %s2875_s9, %s3267_s2 }
  0x38   : > { %p2563_p0 = pnand %p3286_p13, %p2561_p12  ;;  %p2567_p7 = scmp.lt.u32.totalorder %s2565_s29, %s2560_s19 }
  0x39   : > { %p2569_p4 = scmp.lt.u32.totalorder %s2560_s19, %s2875_s9 }
  0x3a   : > { %p2564_p2 = pneg %p2563_p0  ;;  %p2568_p1 = por %p2567_p7, %p2566_p3 }
  0x3c   : > { %p2570_p5 = por %p2569_p4, %p2568_p1 }
  0x3e   : > { %p2571_p6 = pnand %p2570_p5, %p2564_p2 }
  0x40   : > { %2574 = shalt.err (!%p2571_p6)
}
  0x41   : > { %s2575_s25 = scalar_lea.vmem %s2881_s21, 128  ;;  %s2725_s26 = smov [#allocation8]  }
  0x42   : > { %p2576_p9 = scmp.ne.s32.totalorder %s2881_s21, %s2575_s25  ;;  %s2580_s27 = sshll.u32 %s2725_s26, 4  ;;  %s2581_s27 = int_to_ptr.vmem [resolvable:$false] %s2580_s27 }
  0x43   : > { %s2582_s30 = scalar_lea.vmem %s2581_s27, 256  ;;  %p2583_p10 = scmp.lt.s32.totalorder %s2881_s21, %s2581_s27 }
  0x44   : > { %p2578_p12 = pnand %p2576_p9, %p3286_p13  ;;  %p2584_p3 = scmp.lt.s32.totalorder %s2582_s30, %s2575_s25 }
  0x46   : > { %p2579_p0 = pneg %p2578_p12  ;;  %p2585_p7 = por %p2584_p3, %p2583_p10 }
  0x48   : > { %p2586_p1 = pnand %p2585_p7, %p2579_p0 }
  0x4a   : > { %2589 = shalt.err (!%p2586_p1)
}
  0x4b   : > { %2414 = dma.hbm_to_vmem [thread:$0]  (!%p2877_p11), %s2875_s9, 128, %s2881_s21, %s2885_s23  }
  0x4c   : > { %s363_s19 = scalar_lea.vmem [#allocation9], %s2883_s20  ;;  %s2726_s29 = smov [#allocation6]  }
  0x4d   : > { %s370_s28 = sshll.u32 %s363_s19, 4  ;;  %s297_s17 = sshll.u32 %s2726_s29, 4  ;;  %s2914_s28 = int_to_ptr.vmem [resolvable:$true] %s370_s28  ;;  %s298_s17 = int_to_ptr.vmem [resolvable:$true] %s297_s17 }
  0x4e   : > { %s2118_s25 = sshll.u32 %s2720_s12, 9  ;;  %s2590_s30 = scalar_lea.hbm %s3266_s1, 512 }
  0x4f   : > { %p2591_p10 = scmp.ne.s32.totalorder %s3266_s1, %s2590_s30  ;;  %p3297_p2 = pneg %p2827_p8 }
  0x50   : > { %p2597_p6 = scmp.lt.u32.totalorder %s2590_s30, %s3266_s1 }
  0x51   : > { %p2593_p4 = pnand %p2591_p10, %p3297_p2 }
  0x53   : > { %p2594_p5 = pneg %p2593_p4 }
  0x55   : > { %p2599_p9 = pnand %p2597_p6, %p2594_p5 }
  0x57   : > { %2602 = shalt.err (!%p2599_p9)
}
  0x58   : > { %s2603_s20 = scalar_lea.vmem %s298_s17, 512  ;;  %p3298_p0 = pmov %p3297_p2 }
  0x59   : > { %p2604_p12 = scmp.ne.s32.totalorder %s298_s17, %s2603_s20  ;;  %p2611_p1 = scmp.lt.s32.totalorder %s298_s17, %s298_s17 }
  0x5a   : > { %p2612_p13 = scmp.lt.s32.totalorder %s2603_s20, %s2603_s20 }
  0x5b   : > { %p2606_p3 = pnand %p2604_p12, %p3298_p0 }
  0x5c   : > { %p2613_p11 = por %p2612_p13, %p2611_p1 }
  0x5d   : > { %p2607_p7 = pneg %p2606_p3 }
  0x5f   : > { %p2614_p2 = pnand %p2613_p11, %p2607_p7 }
  0x61   : > { %2617 = shalt.err (!%p2614_p2)
}
  0x62   : > { %s3299_s0 = smov 8   ;;  %s3300_s12 = smov 128  }
  0x63   : > { %2410 = dma.hbm_to_vmem [thread:$0]  (!%p2827_p8), %s3266_s1, 512, %s298_s17, [#allocation7], %s3300_s12, %s3300_s12, %s3299_s0  }
  0x64   : > { %s2943_s27 = scalar_lea.hbm %s3272_s7, %s2118_s25  ;;  %p3301_p13 = scmp.ne.s32.totalorder %s3296_s22, 0 }
  0x65   : > { %s2618_s30 = scalar_lea.hbm %s2943_s27, 512  ;;  %s2623_s21 = scalar_lea.hbm %s3272_s7, 1024 }
  0x66   : > { %p2619_p11 = scmp.ne.s32.totalorder %s2943_s27, %s2618_s30  ;;  %p3302_p10 = pneg %p3301_p13 }
  0x67   : > { %p2624_p8 = scmp.lt.u32.totalorder %s2943_s27, %s3272_s7  ;;  %p2625_p6 = scmp.lt.u32.totalorder %s2623_s21, %s2618_s30 }
  0x68   : > { %p2621_p4 = pnand %p2619_p11, %p3302_p10  ;;  %p2627_p12 = scmp.lt.u32.totalorder %s2618_s30, %s2943_s27 }
  0x69   : > { %p2626_p9 = por %p2625_p6, %p2624_p8 }
  0x6a   : > { %p2622_p5 = pneg %p2621_p4 }
  0x6b   : > { %p2628_p0 = por %p2627_p12, %p2626_p9 }
  0x6d   : > { %p2629_p3 = pnand %p2628_p0, %p2622_p5 }
  0x6f   : > { %2632 = shalt.err (!%p2629_p3)
}
  0x70   : > { %s2633_s25 = scalar_lea.vmem %s2914_s28, 512  ;;  %p3303_p1 = pmov %p3302_p10 }
  0x71   : > { %p2634_p7 = scmp.ne.s32.totalorder %s2914_s28, %s2633_s25  ;;  %s2727_s16 = smov [#allocation9]  }
  0x72   : > { %s2638_s19 = sshll.u32 %s2727_s16, 4  ;;  %s2639_s19 = int_to_ptr.vmem [resolvable:$false] %s2638_s19 }
  0x73   : > { %p2636_p2 = pnand %p2634_p7, %p3303_p1  ;;  %s2640_s29 = scalar_lea.vmem %s2639_s19, 1024 }
  0x74   : > { %p2641_p10 = scmp.lt.s32.totalorder %s2914_s28, %s2639_s19  ;;  %p2642_p4 = scmp.lt.s32.totalorder %s2640_s29, %s2633_s25 }
  0x75   : > { %p2637_p11 = pneg %p2636_p2 }
  0x76   : > { %p2643_p8 = por %p2642_p4, %p2641_p10 }
  0x78   : > { %p2644_p6 = pnand %p2643_p8, %p2637_p11 }
  0x7a   : > { %2647 = shalt.err (!%p2644_p6)
}
  0x7b   : > { %2417 = dma.hbm_to_vmem [thread:$0]  (!%p3301_p13), %s2943_s27, 512, %s2914_s28, %s2885_s23, %s3300_s12, %s3300_s12, %s3299_s0  }
  0x7c   : > { %p3304_p5 = scmp.ne.s32.totalorder %s3292_s15, 0 }
  0x7d   : > { %p3305_p9 = scmp.eq.s32.totalorder (!%p3304_p5), %s2806_s13, 0 }
  0x7e   : > { %390 = sbr.rel (%p3304_p5) target bundleno = 2989 (0xbad), region = 56 }
  0x85   : > { %2691 = dma.done.wait (%p3305_p9), [#allocation4], 256   ;;  %p3306_p12 = pmov %p3305_p9 }
  0x86   : > { %p3307_p0 = pmov %p3305_p9 }
  0x87   : > { %2693 = vsyncadd (%p3306_p12), [#allocation4], 4294967040 }
  0x88   : > { %2695 = dma.done.wait (%p3307_p0), [#allocation7], 512   ;;  %p3308_p3 = pmov %p3307_p0 }
  0x89   : > { %s400_s22 = sand.u32 1, %s2806_s13   ;;  %s402_s23 = sand.u32 1, %s2712_s10  }
  0x8a   : > { %2697 = vsyncadd (%p3308_p3), [#allocation7], 4294966784  ;;  %s2984_s28 = sshll.u32 %s402_s23, 3  ;;  %s401_s15 = scalar_lea.sflag [#allocation4], %s400_s22 }
  0x8b   : > { %s404_s0 = scalar_lea.vmem [#allocation8], %s2984_s28  ;;  %p3309_p13 = scmp.ne.s32.totalorder %s3291_s14, 0 }
  0x8d   : > { %2699 = dma.done.wait (%p3309_p13), %s401_s15, 640  }
  0x8e   : > { %2701 = vsyncadd (%p3309_p13), %s401_s15, 4294966656  ;;  %s2072_s12 = sshll.u32 %s402_s23, 5  ;;  %p471_p7 = scmp.lt.s32.totalorder %s2806_s13, 1 }
  0x8f   : > { %s3021_s18 = scalar_lea.vmem [#allocation9], %s2072_s12  ;;  %p3310_p1 = scmp.ne.s32.totalorder %s2806_s13, 0 }
  0x90   : > { %s2993_s26 = scalar_select %p471_p7, %s2806_s13, 1 }
  0x91   : > { %497 = sbr.rel (%p3310_p1) target bundleno = 152 (0x98), region = 76  ;;  %v498_v0 = vld [vmem:[#allocation3] sm:$0xff] (!%p3310_p1)  ;;  %vm500_vm0 = vcmask (!%p3310_p1), 261120   ;;  %v499_v1 = vld [vmem:[#allocation3 + $0x8] sm:$0xff] (!%p3310_p1) }
  0x92   : > { %s2119_s9 = sshll.u32 %s2993_s26, 5  ;;  %s2122_s23 = sshll.u32 %s2993_s26, 6  ;;  %501 = vst.msk [vmem:[#allocation2] sm:$0xff] (!%p3310_p1), %vm500_vm0, %v498_v0  ;;  %502 = vst.msk [vmem:[#allocation2 + $0x8] sm:$0xff] (!%p3310_p1), %vm500_vm0, %v499_v1 }
  0x93   : > { %s3003_s20 = scalar_lea.vmem %s3269_s4, %s2119_s9  ;;  %s3008_s16 = scalar_lea.vmem %s3270_s5, %s2119_s9 }
  0x94   : > { %s3013_s22 = scalar_lea.vmem %s3271_s6, %s2119_s9  ;;  %s3019_s30 = scalar_lea.vmem %s3273_s8, %s2122_s23 }
  0x98 PF: > { %vm511_vm1 = vcmask 261120   ;;  %v507_v3 = vld [vmem:[#allocation6] sm:$0xff]  ;;  %v508_v7 = vld [vmem:[#allocation6 + $0x8] sm:$0xff]  ;;  %v509_v10 = vld [vmem:[#allocation6 + $0x10] sm:$0xff]  ;;  %v539_v55 = vlaneseq  ;;  %vm2729_vm2 = vmmov 0   ;;  %vm811_vm3 = vcmask 130048   ;;  %s3313_s21 = scalar_lea.vmem %s3268_s3, %s2993_s26 }
  0x99   : > { %v3025_v2 = vld [vmem:[#allocation2] sm:$0xff]  ;;  %v3027_v4 = vld [vmem:[#allocation2 + $0x8] sm:$0xff]  ;;  %v551_v6 = vsel %vm511_vm1, %v507_v3, 0.0  ;;  %v554_v9 = vsel %vm511_vm1, %v508_v7, 0.0  ;;  %v510_v11 = vld [vmem:[#allocation6 + $0x18] sm:$0xff]  ;;  %v557_v12 = vsel %vm511_vm1, %v509_v10, 0.0 }
  0x9a   : > { %v512_v5 = vsel %vm511_vm1, %v3025_v2, 0.0  ;;  %552 = vadd.xlane.f32.xlu1 %v551_v6  ;;  %v515_v8 = vsel %vm511_vm1, %v3027_v4, 0.0  ;;  %v560_v13 = vsel %vm511_vm1, %v510_v11, 0.0  ;;  %v619_v44 = vld [vmem:[%s3003_s20] sm:$0xff]  ;;  %v620_v45 = vld [vmem:[%s3003_s20 + $0x8] sm:$0xff]  ;;  %v621_v47 = vld [vmem:[%s3003_s20 + $0x10] sm:$0xff] }
  0x9b   : > { %513 = vadd.xlane.f32.xlu0 %v512_v5  ;;  %v2310_v46 = vpack.c.bf16 %v620_v45, %v619_v44  ;;  %v622_v48 = vld [vmem:[%s3003_s20 + $0x18] sm:$0xff]  ;;  %v706_v50 = vld [vmem:[%s3008_s16] sm:$0xff]  ;;  %v707_v51 = vld [vmem:[%s3008_s16 + $0x8] sm:$0xff]  ;;  %v3075_v61 = vshrl.u32 %v539_v55, 7  ;;  %s2731_s28 = smov 96   ;;  %s2733_s12 = smov 80  }
  0x9c   : > { %v2314_v49 = vpack.c.bf16 %v622_v48, %v621_v47  ;;  %v2318_v52 = vpack.c.bf16 %v707_v51, %v706_v50  ;;  %v2728_v48 = vmov 0.0|0.0   ;;  %vm3111_vm4 = vmpackc.low %vm811_vm3, %vm811_vm3  ;;  %vm1811_vm5 = vcmask 523264   ;;  %p2113_p2 = scmp.ne.s32.totalorder %s2806_s13, 1 }
  0x9d   : > { %2311 = vmatprep.subr.bf16.mxu1 %v2310_v46  ;;  %v541_v6 = vsub.s32 0, %v3075_v61  ;;  %2326 = vmatprep.subr.bf16.mxu0 %v2728_v48 }
  0x9e   : > { %555 = vadd.xlane.f32.xlu1 %v554_v9  ;;  %2313 = vmatpush3.bf16.msra.mxu1 %v2310_v46  ;;  %v3080_v9 = vld [vmem:[%s404_s0] sm:$0xff]  ;;  %s2732_s0 = smov 112  }
  0x9f   : > { %516 = vadd.xlane.f32.xlu0 %v515_v8  ;;  %2315 = vmatprep.subr.bf16.mxu1 %v2314_v49 }
  0xa2   : > { %561 = vadd.xlane.f32.xlu1 %v560_v13  ;;  %2317 = vmatpush3.bf16.msra.mxu1 %v2314_v49  ;;  %v542_v13 = vrot.slane %v3080_v9, %v541_v6  ;;  %v2730_v49 = vmov 0.0  }
  0xa3   : > { %558 = vadd.xlane.f32.xlu0 %v557_v12  ;;  %2319 = vmatprep.subr.bf16.mxu1 %v2318_v52 }
  0xa4   : > { %2214 = vmatprep.mubr.msk.f32.mxu0 %vm2729_vm2, %v2730_v49 }
 0x127   : > { %v553_v15 = vpop.xlane.xlu1 %552 }
 0x128   : > { %v514_v14 = vpop.xlane.xlu0 %513  ;;  %v563_v17 = vmul.f32 0.03125, %v553_v15 }
 0x129   : > { %v519_v16 = vmul.f32 0.03125, %v514_v14 }
 0x12a   : > { %v3040_v19 = vsub.f32 %v507_v3, %v563_v17 }
 0x12b   : > { %v3038_v18 = vsub.f32 %v3025_v2, %v519_v16  ;;  %v556_v21 = vpop.xlane.xlu1 %555  ;;  %v605_v16 = vsub.s32 2, %v3075_v61 }
 0x12c   : > { %v517_v20 = vpop.xlane.xlu0 %516  ;;  %v564_v23 = vmul.f32 0.03125, %v556_v21  ;;  %v571_v25 = vmul.f32 %v3040_v19, %v3040_v19  ;;  %v613_v21 = vsub.s32 3, %v3075_v61 }
 0x12d   : > { %v520_v22 = vmul.f32 0.03125, %v517_v20  ;;  %v523_v24 = vmul.f32 %v3038_v18, %v3038_v18 }
 0x12e   : > { %v3049_v27 = vsub.f32 %v508_v7, %v564_v23  ;;  %v575_v31 = vsel %vm511_vm1, %v571_v25, 0.0 }
 0x12f   : > { %v3047_v26 = vsub.f32 %v3027_v4, %v520_v22  ;;  %v525_v28 = vsel %vm511_vm1, %v523_v24, 0.0  ;;  %v562_v30 = vpop.xlane.xlu1 %561  ;;  %v606_v24 = vrot.slane %v3080_v9, %v605_v16 }
 0x130   : > { %526 = vadd.xlane.f32.xlu0 %v525_v28  ;;  %v559_v29 = vpop.xlane.xlu0 %558  ;;  %v566_v33 = vmul.f32 0.03125, %v562_v30  ;;  %v572_v35 = vmul.f32 %v3049_v27, %v3049_v27 }
 0x131   : > { %v565_v32 = vmul.f32 0.03125, %v559_v29  ;;  %v524_v34 = vmul.f32 %v3047_v26, %v3047_v26 }
 0x132   : > { %v3059_v37 = vsub.f32 %v510_v11, %v566_v33  ;;  %v578_v39 = vsel %vm511_vm1, %v572_v35, 0.0  ;;  %v547_v11 = vsub.s32 1, %v3075_v61  ;;  %v709_v33 = vld [vmem:[%s3008_s16 + $0x18] sm:$0xff] }
 0x133   : > { %v3057_v36 = vsub.f32 %v509_v10, %v565_v32  ;;  %v528_v38 = vsel %vm511_vm1, %v524_v34, 0.0  ;;  %v708_v32 = vld [vmem:[%s3008_s16 + $0x10] sm:$0xff] }
 0x134   : > { %576 = vadd.xlane.f32.xlu0 %v575_v31  ;;  %529 = vadd.xlane.f32.xlu1 %v528_v38  ;;  %v574_v41 = vmul.f32 %v3059_v37, %v3059_v37  ;;  %v548_v20 = vrot.slane %v3080_v9, %v547_v11  ;;  %v614_v31 = vrot.slane %v3080_v9, %v613_v21 }
 0x135   : > { %v573_v40 = vmul.f32 %v3057_v36, %v3057_v36 }
 0x136   : > { %v584_v43 = vsel %vm511_vm1, %v574_v41, 0.0  ;;  %v2322_v41 = vpack.c.bf16 %v709_v33, %v708_v32 }
 0x137   : > { %v581_v42 = vsel %vm511_vm1, %v573_v40, 0.0 }
 0x138   : > { %579 = vadd.xlane.f32.xlu1 %v578_v39  ;;  %582 = vadd.xlane.f32.xlu0 %v581_v42 }
 0x13c   : > { %585 = vadd.xlane.f32.xlu1 %v584_v43 }
 0x1bd   : > { %v527_v53 = vpop.xlane.xlu0 %526 }
 0x1be   : > { %v531_v54 = vmul.f32 0.03125, %v527_v53 }
 0x1c0   : > { %v533_v56 = vadd.f32 1e-05, %v531_v54 }
 0x1c1   : > { %v530_v57 = vpop.xlane.xlu1 %529  ;;  %v577_v58 = vpop.xlane.xlu0 %576 }
 0x1c2   : > { %2500 = vrsqrt.f32 %v533_v56  ;;  %v532_v59 = vmul.f32 0.03125, %v530_v57  ;;  %v587_v60 = vmul.f32 0.03125, %v577_v58 }
 0x1c4   : > { %v534_v62 = vadd.f32 1e-05, %v532_v59  ;;  %v591_v63 = vadd.f32 1e-05, %v587_v60 }
 0x1c5   : > { %v580_v0 = vpop.xlane.xlu1 %579  ;;  %v583_v1 = vpop.xlane.xlu0 %582 }
 0x1c6   : > { %2502 = vrsqrt.f32 %v534_v62  ;;  %v588_v3 = vmul.f32 0.03125, %v580_v0  ;;  %v589_v5 = vmul.f32 0.03125, %v583_v1 }
 0x1c7   : > { %2504 = vrsqrt.f32 %v591_v63 }
 0x1c8   : > { %v592_v7 = vadd.f32 1e-05, %v588_v3  ;;  %v593_v8 = vadd.f32 1e-05, %v589_v5 }
 0x1c9   : > { %v586_v10 = vpop.xlane.xlu1 %585 }
 0x1ca   : > { %2506 = vrsqrt.f32 %v592_v7  ;;  %v590_v12 = vmul.f32 0.03125, %v586_v10 }
 0x1cb   : > { %2508 = vrsqrt.f32 %v593_v8 }
 0x1cc   : > { %v2501_v14 = vpop.eup %2500  ;;  %v594_v15 = vadd.f32 1e-05, %v590_v12 }
 0x1cd   : > { %v537_v17 = vmul.f32 %v2501_v14, %v3038_v18 }
 0x1ce   : > { %2510 = vrsqrt.f32 %v594_v15 }
 0x1cf   : > { %v543_v22 = vmul.f32 %v542_v13, %v537_v17 }
 0x1d0   : > { %v2503_v23 = vpop.eup %2502 }
 0x1d1   : > { %v2505_v25 = vpop.eup %2504  ;;  %v538_v28 = vmul.f32 %v2503_v23, %v3047_v26  ;;  %v549_v29 = vadd.f32 %v548_v20, %v543_v22 }
 0x1d2   : > { %v599_v30 = vmul.f32 %v2505_v25, %v3040_v19 }
 0x1d3   : > { %v544_v18 = vmul.f32 %v542_v13, %v538_v28  ;;  %2193 = vmatprep.mubr.msk.f32.mxu1 %vm511_vm1, %v549_v29 }
 0x1d4   : > { %v2507_v34 = vpop.eup %2506  ;;  %v607_v35 = vmul.f32 %v606_v24, %v599_v30 }
 0x1d5   : > { %v2509_v38 = vpop.eup %2508  ;;  %v600_v39 = vmul.f32 %v2507_v34, %v3049_v27  ;;  %v550_v40 = vadd.f32 %v548_v20, %v544_v18 }
 0x1d6   : > { %v615_v42 = vadd.f32 %v614_v31, %v607_v35  ;;  %v601_v26 = vmul.f32 %v2509_v38, %v3057_v36 }
 0x1d7   : > { %2194 = vmatmul.mubr.msk.f32.vlgmr.msra.gmra.mrb[0].mxu1 %vm511_vm1, %v550_v40  ;;  %v608_v43 = vmul.f32 %v606_v24, %v600_v39 }
 0x1d8   : > { %v2511_v19 = vpop.eup %2510  ;;  %2321 = vmatpush3.bf16.msra.mxu1 %v2318_v52  ;;  %2204 = vmatprep.mubr.msk.f32.mxu1 %vm511_vm1, %v615_v42  ;;  %v609_v45 = vmul.f32 %v606_v24, %v601_v26 }
 0x1d9   : > { %2323 = vmatprep.subr.bf16.mxu1 %v2322_v41  ;;  %v602_v44 = vmul.f32 %v2511_v19, %v3059_v37  ;;  %v616_v46 = vadd.f32 %v614_v31, %v608_v43 }
 0x1da   : > { %v617_v27 = vadd.f32 %v614_v31, %v609_v45 }
 0x1db   : > { %v610_v47 = vmul.f32 %v606_v24, %v602_v44 }
 0x1dc   : > { %2325 = vmatpush3.bf16.msra.mxu1 %v2322_v41 }
 0x1dd   : > { %v618_v36 = vadd.f32 %v614_v31, %v610_v47  ;;  %2330 = vmatprep.subr.bf16.mxu1 %v2728_v48 }
 0x1df   : > { %2205 = vmatmul.mubr.msk.f32.vlgmr.msra.gmra.mrb[2].mxu1 %vm511_vm1, %v616_v46 }
 0x1e0   : > { %2207 = vmatprep.mubr.msk.f32.mxu1 %vm511_vm1, %v617_v27 }
 0x1e3   : > { %2208 = vmatmul.mubr.msk.f32.gmra.mrb[4].mxu1 %vm511_vm1, %v618_v36 }
 0x1e4   : > { %2221 = vmatprep.mubr.msk.f32.mxu1 %vm2729_vm2, %v2730_v49 }
 0x2aa   : > { %v2195_v37 = vpop.f32.mrb[0].mxu1 }
 0x2ab   : > { %v695_v50 = vpop.f32.mrb[1].mxu1  ;;  %v705_v62 = vmul.f32 0.25, %v2195_v37 }
 0x2ac   : > { %v704_v60 = vmul.f32 0.25, %v695_v50 }
 0x2b2   : > { %v2206_v51 = vpop.f32.mrb[2].mxu1 }
 0x2b3   : > { %v788_v52 = vpop.f32.mrb[3].mxu1 }
 0x2b4   : > { %v2327_v54 = vpack.c.bf16 %v2206_v51, %v788_v52  ;;  %v3115_v55 = vpack.i.bf16 %v2206_v51, %v788_v52 }
 0x2b6   : > { %v2209_v56 = vpop.f32.mrb[4].mxu1  ;;  %2329 = vmatpush3.bf16.xpose.msk.msra.mxu0 %vm3111_vm4, %v2327_v54 }
 0x2b7   : > { %v798_v57 = vpop.f32.mrb[5].mxu1  ;;  %2334 = vmatprep.subr.bf16.mxu0 %v2728_v48 }
 0x2b8   : > { %v2331_v58 = vpack.c.bf16 %v2209_v56, %v798_v57  ;;  %v3120_v59 = vpack.i.bf16 %v2209_v56, %v798_v57 }
 0x2ba   : > { %2333 = vmatpush3.bf16.xpose.msk.msra.mxu1 %vm3111_vm4, %v2331_v58 }
 0x2bb   : > { %2337 = vmatprep.subr.bf16.mxu1 %v2728_v48 }
 0x2bd   : > { %2215 = vmatmul.mubr.msk.f32.vlgmr.msra.gmra.mrb[0].mxu0 %vm811_vm3, %v704_v60 }
 0x2be   : > { %2228 = vmatprep.mubr.msk.f32.mxu0 %vm2729_vm2, %v2730_v49 }
 0x2c1   : > { %2222 = vmatmul.mubr.msk.f32.vlgmr.msra.gmra.mrb[6].mxu1 %vm811_vm3, %v705_v62 }
 0x2c2   : > { %2235 = vmatprep.mubr.msk.f32.mxu1 %vm2729_vm2, %v2730_v49 }
 0x390   : > { %v887_v63 = vpop.f32.mrb[0].mxu0 }
 0x391   : > { %v2216_v0 = vpop.f32.mrb[1].mxu0  ;;  %v970_v1 = vsel %vm811_vm3, %v887_v63, -inf }
 0x392   : > { %971 = vmax.xlane.f32.xlu0 %v970_v1 }
 0x394   : > { %v966_v3 = vpop.f32.mrb[6].mxu1 }
 0x395   : > { %v2223_v5 = vpop.f32.mrb[7].mxu1  ;;  %v973_v6 = vsel %vm811_vm3, %v966_v3, -inf }
 0x396   : > { %974 = vmax.xlane.f32.xlu1 %v973_v6 }
 0x3a7   : > { %2476 = vrot.lane.b32.xlu1 %v3120_v59, %s2731_s28 }
 0x3ab   : > { %2481 = vrot.lane.b32.xlu1 %v3115_v55, %s2732_s0 }
 0x3af   : > { %2486 = vrot.lane.b32.xlu1 %v3120_v59, %s2732_s0 }
 0x41f   : > { %v972_v7 = vpop.xlane.xlu0 %971 }
 0x420   : > { %v976_v8 = vsub.f32 %v887_v63, %v972_v7 }
 0x422   : > { %v978_v10 = vmul.f32 1.442695, %v976_v8 }
 0x423   : > { %v975_v11 = vpop.xlane.xlu1 %974 }
 0x424   : > { %2512 = vpow2.f32 %v978_v10  ;;  %v977_v12 = vsub.f32 %v966_v3, %v975_v11 }
 0x426   : > { %v980_v13 = vmul.f32 1.442695, %v977_v12 }
 0x427   : > { %v2477_v14 = vpop.permute.xlu1 %2476 }
 0x428   : > { %2514 = vpow2.f32 %v980_v13  ;;  %v2479_v15 = vunpack.i.h.bf16 %v2477_v14  ;;  %v2478_v16 = vunpack.i.l.bf16 %v2477_v14 }
 0x42a   : > { %v2338_v17 = vpack.c.bf16 %v2479_v15, %v2478_v16 }
 0x42b   : > { %v2482_v24 = vpop.permute.xlu1 %2481 }
 0x42c   : > { %2339 = vmatpush3.bf16.msra.mxu1 %v2338_v17  ;;  %v2484_v35 = vunpack.i.h.bf16 %v2482_v24  ;;  %v2483_v38 = vunpack.i.l.bf16 %v2482_v24 }
 0x42d   : > { %2344 = vmatprep.subr.bf16.mxu1 %v2728_v48 }
 0x42e   : > { %v2513_v20 = vpop.eup %2512  ;;  %v2341_v26 = vpack.c.bf16 %v2484_v35, %v2483_v38 }
 0x42f   : > { %v982_v21 = vsel %vm811_vm3, %v2513_v20, 0.0  ;;  %v2487_v25 = vpop.permute.xlu1 %2486 }
 0x430   : > { %983 = vadd.xlane.f32.xlu0 %v982_v21  ;;  %v2489_v41 = vunpack.i.h.bf16 %v2487_v25  ;;  %v2488_v42 = vunpack.i.l.bf16 %v2487_v25  ;;  %v807_v25 = vld [vmem:[%s3013_s22] sm:$0xff] }
 0x432   : > { %v2515_v22 = vpop.eup %2514  ;;  %v2345_v44 = vpack.c.bf16 %v2489_v41, %v2488_v42 }
 0x433   : > { %v985_v23 = vsel %vm811_vm3, %v2515_v22, 0.0 }
 0x434   : > { %986 = vadd.xlane.f32.xlu1 %v985_v23  ;;  %v810_v23 = vld [vmem:[%s3013_s22 + $0x18] sm:$0xff] }
 0x445   : > { %1234 = vrot.lane.b32.xlu1 %v705_v62, %s2732_s0 }
 0x446   : > { %2471 = vrot.lane.b32.xlu0 %v3115_v55, %s2731_s28 }
 0x44a   : > { %1152 = vrot.lane.b32.xlu0 %v704_v60, %s2732_s0 }
 0x4bd   : > { %v984_v28 = vpop.xlane.xlu0 %983 }
 0x4be   : > { %v988_v29 = vadd.f32 1.0, %v984_v28  ;;  %v808_v28 = vld [vmem:[%s3013_s22 + $0x8] sm:$0xff] }
 0x4c0   : > { %2516 = vrcp.f32 %v988_v29  ;;  %v2358_v29 = vpack.c.bf16 %v808_v28, %v807_v25  ;;  %v2108_v28 = vld [vmem:[%s3313_s21] ss:$0 sm:$0xff] }
 0x4c1   : > { %v987_v30 = vpop.xlane.xlu1 %986  ;;  %v2472_v31 = vpop.permute.xlu0 %2471 }
 0x4c2   : > { %v989_v32 = vadd.f32 1.0, %v987_v30  ;;  %v2474_v33 = vunpack.i.h.bf16 %v2472_v31  ;;  %v2473_v18 = vunpack.i.l.bf16 %v2472_v31 }
 0x4c4   : > { %2518 = vrcp.f32 %v989_v32  ;;  %v2335_v34 = vpack.c.bf16 %v2474_v33, %v2473_v18  ;;  %v1664_v18 = vsub.s32 4, %v3075_v61 }
 0x4c5   : > { %v1153_v45 = vpop.permute.xlu0 %1152  ;;  %v1235_v46 = vpop.permute.xlu1 %1234 }
 0x4c6   : > { %2336 = vmatpush3.bf16.msra.mxu0 %v2335_v34  ;;  %v1665_v34 = vrot.slane %v3080_v9, %v1664_v18 }
 0x4c7   : > { %2340 = vmatprep.subr.bf16.mxu0 %v2728_v48 }
 0x4ca   : > { %v2517_v39 = vpop.eup %2516 }
 0x4cb   : > { %v992_v40 = vmul.f32 %v2517_v39, %v2513_v20 }
 0x4cd   : > { %2229 = vmatmul.mubr.msk.f32.vlgmr.msra.gmra.mrb[2].mxu0 %vm811_vm3, %v992_v40 }
 0x4ce   : > { %v2519_v19 = vpop.eup %2518  ;;  %2242 = vmatprep.mubr.msk.f32.mxu0 %vm2729_vm2, %v2730_v49 }
 0x4cf   : > { %2343 = vmatpush3.bf16.xpose.msk.msra.mxu0 %vm3111_vm4, %v2341_v26  ;;  %v993_v43 = vmul.f32 %v2519_v19, %v2515_v22  ;;  %v809_v22 = vld [vmem:[%s3013_s22 + $0x10] sm:$0xff] }
 0x4d0   : > { %2348 = vmatprep.subr.bf16.mxu0 %v2728_v48  ;;  %v2354_v24 = vpack.c.bf16 %v810_v23, %v809_v22  ;;  %v1805_v23 = vld [vmem:[%s3019_s30 + $0x30] sm:$0xff] }
 0x4d1   : > { %2236 = vmatmul.mubr.msk.f32.vlgmr.msra.gmra.mrb[8].mxu1 %vm811_vm3, %v993_v43 }
 0x4d2   : > { %2347 = vmatpush3.bf16.xpose.msk.msra.mxu1 %vm3111_vm4, %v2345_v44  ;;  %2249 = vmatprep.mubr.msk.f32.mxu1 %vm2729_vm2, %v2730_v49 }
 0x4d3   : > { %2351 = vmatprep.subr.bf16.mxu1 %v2728_v48 }
 0x4d6   : > { %2243 = vmatmul.mubr.msk.f32.vlgmr.msra.gmra.mrb[4].mxu0 %vm811_vm3, %v1153_v45 }
 0x4d7   : > { %2256 = vmatprep.mubr.msk.f32.mxu0 %vm2729_vm2, %v2730_v49 }
 0x4d9   : > { %2250 = vmatmul.mubr.msk.f32.vlgmr.msra.gmra.mrb[10].mxu1 %vm811_vm3, %v1235_v46 }
 0x4da   : > { %2263 = vmatprep.mubr.msk.f32.mxu1 %vm2729_vm2, %v2730_v49 }
 0x5a0   : > { %v3159_v47 = vpop.f32.mrb[2].mxu0 }
 0x5a1   : > { %v2230_v27 = vpop.f32.mrb[3].mxu0 }
 0x5a4   : > { %v3161_v36 = vpop.f32.mrb[8].mxu1 }
 0x5a5   : > { %v2237_v37 = vpop.f32.mrb[9].mxu1 }
 0x5a9   : > { %v1230_v50 = vpop.f32.mrb[4].mxu0 }
 0x5aa   : > { %v2244_v48 = vpop.f32.mrb[5].mxu0  ;;  %v1316_v51 = vsel %vm811_vm3, %v1230_v50, -inf }
 0x5ab   : > { %1317 = vmax.xlane.f32.xlu0 %v1316_v51  ;;  %v1707_v48 = vld [vmem:[%s3021_s18 + $0x8] sm:$0xff] }
 0x5ac   : > { %v1312_v52 = vpop.f32.mrb[10].mxu1 }
 0x5ad   : > { %v2251_v53 = vpop.f32.mrb[11].mxu1  ;;  %v1319_v54 = vsel %vm811_vm3, %v1312_v52, -inf }
 0x5ae   : > { %1320 = vmax.xlane.f32.xlu1 %v1319_v54  ;;  %v1709_v53 = vld [vmem:[%s3021_s18 + $0x18] sm:$0xff] }
 0x5bf   : > { %2496 = vrot.lane.b32.xlu1 %v3120_v59, %s2733_s12 }
 0x638   : > { %v1318_v49 = vpop.xlane.xlu0 %1317 }
 0x639   : > { %v1322_v56 = vsub.f32 %v1230_v50, %v1318_v49  ;;  %v1706_v50 = vld [vmem:[%s3021_s18] sm:$0xff]  ;;  %v1799_v49 = vld [vmem:[%s3019_s30] sm:$0xff] }
 0x63a   : > { %v2362_v51 = vpack.c.bf16 %v1707_v48, %v1706_v50 }
 0x63b   : > { %v1324_v57 = vmul.f32 1.442695, %v1322_v56  ;;  %v1321_v58 = vpop.xlane.xlu1 %1320  ;;  %v1800_v56 = vld [vmem:[%s3019_s30 + $0x8] sm:$0xff] }
 0x63c   : > { %v1323_v60 = vsub.f32 %v1312_v52, %v1321_v58  ;;  %v1708_v52 = vld [vmem:[%s3021_s18 + $0x10] sm:$0xff]  ;;  %v2370_v58 = vpack.c.bf16 %v1800_v56, %v1799_v49 }
 0x63d   : > { %2520 = vpow2.f32 %v1324_v57  ;;  %v2366_v54 = vpack.c.bf16 %v1709_v53, %v1708_v52  ;;  %v1801_v57 = vld [vmem:[%s3019_s30 + $0x10] sm:$0xff] }
 0x63e   : > { %v1326_v62 = vmul.f32 1.442695, %v1323_v60  ;;  %v1802_v60 = vld [vmem:[%s3019_s30 + $0x18] sm:$0xff] }
 0x63f   : > { %v2497_v63 = vpop.permute.xlu1 %2496 }
 0x640   : > { %2522 = vpow2.f32 %v1326_v62  ;;  %v2499_v0 = vunpack.i.h.bf16 %v2497_v63  ;;  %v2498_v1 = vunpack.i.l.bf16 %v2497_v63  ;;  %v2374_v62 = vpack.c.bf16 %v1802_v60, %v1801_v57  ;;  %v1803_v63 = vld [vmem:[%s3019_s30 + $0x20] sm:$0xff] }
 0x642   : > { %v2352_v3 = vpack.c.bf16 %v2499_v0, %v2498_v1  ;;  %v1804_v0 = vld [vmem:[%s3019_s30 + $0x28] sm:$0xff] }
 0x643   : > { %v2378_v1 = vpack.c.bf16 %v1804_v0, %v1803_v63 }
 0x644   : > { %2353 = vmatpush3.bf16.msra.mxu1 %v2352_v3 }
 0x645   : > { %2363 = vmatprep.subr.bf16.mxu1 %v2362_v51 }
 0x647   : > { %v2521_v5 = vpop.eup %2520 }
 0x648   : > { %v1328_v6 = vsel %vm811_vm3, %v2521_v5, 0.0 }
 0x649   : > { %1329 = vadd.xlane.f32.xlu0 %v1328_v6 }
 0x64a   : > { %v2523_v7 = vpop.eup %2522 }
 0x64b   : > { %v1331_v59 = vsel %vm811_vm3, %v2523_v7, 0.0 }
 0x64d   : > { %1332 = vadd.xlane.f32.xlu0 %v1331_v59 }
 0x663   : > { %2491 = vrot.lane.b32.xlu0 %v3115_v55, %s2733_s12 }
 0x6d6   : > { %v1330_v8 = vpop.xlane.xlu0 %1329 }
 0x6d7   : > { %v1334_v10 = vadd.f32 1.0, %v1330_v8 }
 0x6d9   : > { %2524 = vrcp.f32 %v1334_v10  ;;  %v1696_v10 = vsub.s32 5, %v3075_v61 }
 0x6da   : > { %v1333_v11 = vpop.xlane.xlu0 %1332 }
 0x6db   : > { %v1335_v12 = vadd.f32 1.0, %v1333_v11  ;;  %v1702_v11 = vsub.s32 6, %v3075_v61 }
 0x6dd   : > { %2526 = vrcp.f32 %v1335_v12  ;;  %v1697_v12 = vrot.slane %v3080_v9, %v1696_v10 }
 0x6de   : > { %v2492_v13 = vpop.permute.xlu0 %2491 }
 0x6df   : > { %v2494_v14 = vunpack.i.h.bf16 %v2492_v13  ;;  %v2493_v15 = vunpack.i.l.bf16 %v2492_v13 }
 0x6e1   : > { %v2349_v16 = vpack.c.bf16 %v2494_v14, %v2493_v15 }
 0x6e3   : > { %v2525_v17 = vpop.eup %2524  ;;  %2350 = vmatpush3.bf16.msra.mxu0 %v2349_v16 }
 0x6e4   : > { %v1338_v20 = vmul.f32 %v2525_v17, %v2521_v5  ;;  %2355 = vmatprep.subr.bf16.mxu0 %v2354_v24  ;;  %v1703_v17 = vrot.slane %v3080_v9, %v1702_v11 }
 0x6e6   : > { %2257 = vmatmul.mubr.msk.f32.vlgmr.msra.gmra.mrb[6].mxu0 %vm811_vm3, %v1338_v20 }
 0x6e7   : > { %v2527_v55 = vpop.eup %2526  ;;  %2357 = vmatpush3.bf16.msra.mxu0 %v2354_v24  ;;  %v1806_v24 = vld [vmem:[%s3019_s30 + $0x38] sm:$0xff] }
 0x6e8   : > { %v1339_v21 = vmul.f32 %v2527_v55, %v2523_v7  ;;  %2359 = vmatprep.subr.bf16.mxu0 %v2358_v29  ;;  %v2382_v25 = vpack.c.bf16 %v1806_v24, %v1805_v23 }
 0x6ea   : > { %2264 = vmatmul.mubr.msk.f32.vlgmr.msra.gmra.mrb[12].mxu1 %vm811_vm3, %v1339_v21 }
 0x6eb   : > { %2365 = vmatpush3.bf16.msra.mxu1 %v2362_v51 }
 0x6ec   : > { %2367 = vmatprep.subr.bf16.mxu1 %v2366_v54 }
 0x6ef   : > { %2369 = vmatpush3.bf16.msra.mxu1 %v2366_v54 }
 0x7b9   : > { %v1415_v30 = vpop.f32.mrb[6].mxu0 }
 0x7ba   : > { %v2258_v31 = vpop.f32.mrb[7].mxu0  ;;  %2270 = vmatprep.mubr.msk.f32.mxu0 %vm811_vm3, %v1415_v30 }
 0x7bd   : > { %v1494_v32 = vpop.f32.mrb[12].mxu1 }
 0x7be   : > { %v2265_v33 = vpop.f32.mrb[13].mxu1  ;;  %2271 = vmatmul.mubr.msk.f32.vlgmr.msra.gmra.mrb[8].mxu0 %vm811_vm3, %v1494_v32 }
 0x7bf   : > { %2361 = vmatpush3.bf16.msra.mxu0 %v2358_v29  ;;  %2277 = vmatprep.mubr.msk.f32.mxu0 %vm811_vm3, %v3159_v47 }
 0x7c0   : > { %2371 = vmatprep.subr.bf16.mxu0 %v2370_v58 }
 0x7c6   : > { %2278 = vmatmul.mubr.msk.f32.vlgmr.msra.gmra.mrb[8].mxu0 %vm811_vm3, %v3161_v36 }
 0x7c7   : > { %2373 = vmatpush3.bf16.msra.mxu0 %v2370_v58 }
 0x7c8   : > { %2375 = vmatprep.subr.bf16.mxu0 %v2374_v62 }
 0x7cb   : > { %2377 = vmatpush3.bf16.msra.mxu0 %v2374_v62 }
 0x7cc   : > { %2379 = vmatprep.subr.bf16.mxu0 %v2378_v1 }
 0x7cf   : > { %2381 = vmatpush3.bf16.msra.mxu0 %v2378_v1 }
 0x7d0   : > { %2383 = vmatprep.subr.bf16.mxu0 %v2382_v25 }
 0x7d3   : > { %2385 = vmatpush3.bf16.msra.mxu0 %v2382_v25 }
 0x899   : > { %v2279_v35 = vpop.f32.mrb[8].mxu0 }
 0x89a   : > { %v1661_v38 = vadd.f32 %v2279_v35, %v3027_v4  ;;  %v1651_v39 = vpop.f32.mrb[9].mxu0 }
 0x89b   : > { %v1660_v40 = vadd.f32 %v1651_v39, %v3025_v2 }
 0x89c   : > { %v3185_v41 = vadd.f32 %v1665_v34, %v1661_v38 }
 0x89d   : > { %v3187_v42 = vadd.f32 %v1665_v34, %v1660_v40  ;;  %v1809_v34 = vsub.s32 7, %v3075_v61 }
 0x89e   : > { %v1671_v26 = vsel %vm511_vm1, %v3185_v41, 0.0 }
 0x89f   : > { %1672 = vadd.xlane.f32.xlu0 %v1671_v26  ;;  %v1668_v19 = vsel %vm511_vm1, %v3187_v42, 0.0  ;;  %v1810_v35 = vrot.slane %v3080_v9, %v1809_v34 }
 0x8a0   : > { %1669 = vadd.xlane.f32.xlu1 %v1668_v19 }
 0x92c   : > { %v1673_v43 = vpop.xlane.xlu0 %1672 }
 0x92d   : > { %v1675_v4 = vmul.f32 0.03125, %v1673_v43  ;;  %v1670_v44 = vpop.xlane.xlu1 %1669 }
 0x92e   : > { %v1674_v2 = vmul.f32 0.03125, %v1670_v44 }
 0x92f   : > { %v1677_v45 = vsub.f32 %v3185_v41, %v1675_v4 }
 0x930   : > { %v1676_v46 = vsub.f32 %v3187_v42, %v1674_v2 }
 0x931   : > { %v1679_v47 = vmul.f32 %v1677_v45, %v1677_v45 }
 0x932   : > { %v1678_v27 = vmul.f32 %v1676_v46, %v1676_v46 }
 0x933   : > { %v1683_v36 = vsel %vm511_vm1, %v1679_v47, 0.0 }
 0x934   : > { %1684 = vadd.xlane.f32.xlu1 %v1683_v36  ;;  %v1680_v37 = vsel %vm511_vm1, %v1678_v27, 0.0 }
 0x935   : > { %1681 = vadd.xlane.f32.xlu0 %v1680_v37 }
 0x9c1   : > { %v1685_v3 = vpop.xlane.xlu1 %1684 }
 0x9c2   : > { %v1687_v5 = vmul.f32 0.03125, %v1685_v3  ;;  %v1682_v6 = vpop.xlane.xlu0 %1681 }
 0x9c3   : > { %v1686_v7 = vmul.f32 0.03125, %v1682_v6 }
 0x9c4   : > { %v1689_v59 = vadd.f32 1e-05, %v1687_v5 }
 0x9c5   : > { %v1688_v8 = vadd.f32 1e-05, %v1686_v7 }
 0x9c6   : > { %2528 = vrsqrt.f32 %v1689_v59 }
 0x9c7   : > { %2530 = vrsqrt.f32 %v1688_v8 }
 0x9d0   : > { %v2529_v13 = vpop.eup %2528 }
 0x9d1   : > { %v2531_v14 = vpop.eup %2530  ;;  %v1693_v15 = vmul.f32 %v2529_v13, %v1677_v45 }
 0x9d2   : > { %v1692_v16 = vmul.f32 %v2531_v14, %v1676_v46 }
 0x9d3   : > { %v1699_v20 = vmul.f32 %v1697_v12, %v1693_v15 }
 0x9d4   : > { %v1698_v55 = vmul.f32 %v1697_v12, %v1692_v16 }
 0x9d5   : > { %v1705_v22 = vadd.f32 %v1703_v17, %v1699_v20 }
 0x9d6   : > { %v1704_v21 = vadd.f32 %v1703_v17, %v1698_v55 }
 0x9d8   : > { %2288 = vmatprep.mubr.msk.f32.mxu1 %vm511_vm1, %v1704_v21 }
 0x9d9   : > { %2289 = vmatmul.mubr.msk.f32.vlgmr.msra.gmra.mrb[14].mxu1 %vm511_vm1, %v1705_v22 }
 0xaac   : > { %v2290_v29 = vpop.f32.mrb[14].mxu1 }
 0xaad   : > { %v1794_v30 = vadd.f32 %v2290_v29, %v2108_v28  ;;  %v1788_v31 = vpop.f32.mrb[15].mxu1 }
 0xaae   : > { %v1789_v32 = vadd.f32 %v2108_v28, %v1788_v31 }
 0xaaf   : > { %v1798_v18 = vmax.f32 %v1794_v30, 0.0 }
 0xab0   : > { %v1797_v33 = vmax.f32 %v1789_v32, 0.0 }
 0xab2   : > { %2307 = vmatprep.mubr.msk.f32.mxu0 %vm1811_vm5, %v1797_v33 }
 0xab3   : > { %2308 = vmatmul.mubr.msk.f32.vlgmr.msra.gmra.mrb[10].mxu0 %vm1811_vm5, %v1798_v18 }
 0xb86   : > { %v2309_v38 = vpop.f32.mrb[10].mxu0  ;;  %1900 = sbr.rel (%p2113_p2) target bundleno = 2957 (0xb8d), region = 80 }
 0xb87   : > { %v1890_v39 = vadd.f32 %v2309_v38, %v1810_v35  ;;  %v1884_v40 = vpop.f32.mrb[11].mxu0 }
 0xb88   : > { %v1885_v26 = vadd.f32 %v1884_v40, %v1810_v35 }
 0xb89   : > { %v1894_v19 = vadd.f32 %v1890_v39, %v3185_v41 }
 0xb8a   : > { %v1893_v43 = vadd.f32 %v1885_v26, %v3187_v42 }
 0xb8b   : > { %1896 = vst.msk [vmem:[#allocation2 + $0x8] sm:$0xff] %vm511_vm1, %v1894_v19  ;;  %1902 = vst.msk [vmem:[#allocation10 + $0x8] sm:$0xff] (!%p2113_p2), %vm511_vm1, %v1894_v19 }
 0xb8c   : > { %1895 = vst.msk [vmem:[#allocation2] sm:$0xff] %vm511_vm1, %v1893_v43  ;;  %1901 = vst.msk [vmem:[#allocation10] sm:$0xff] (!%p2113_p2), %vm511_vm1, %v1893_v43 }
 0xb8d PF: > { %p2423_p11 = scmp.eq.s32.totalorder %s2806_s13, 1  ;;  %s2734_s26 = smov [#allocation10]  }
 0xb8e   : > { %s1909_s17 = sshll.u32 %s2734_s26, 4  ;;  %s1910_s17 = int_to_ptr.vmem [resolvable:$true] %s1909_s17 }
 0xb8f   : > { %s2648_s20 = scalar_lea.vmem %s1910_s17, 256  ;;  %p2655_p6 = scmp.lt.s32.totalorder %s1910_s17, %s1910_s17 }
 0xb90   : > { %p2649_p10 = scmp.ne.s32.totalorder %s1910_s17, %s2648_s20  ;;  %p2656_p5 = scmp.lt.s32.totalorder %s2648_s20, %s2648_s20 }
 0xb92   : > { %p2650_p4 = pnand %p2649_p10, %p2423_p11  ;;  %p2657_p9 = por %p2656_p5, %p2655_p6 }
 0xb94   : > { %p2651_p8 = pneg %p2650_p4 }
 0xb96   : > { %p2658_p12 = pnand %p2657_p9, %p2651_p8 }
 0xb98   : > { %2661 = shalt.err (!%p2658_p12)
}
 0xb99   : > { %s3314_s16 = sld [smem:[#allocation17_spill]] }
 0xb9f   : > { %s2662_s19 = scalar_lea.hbm %s3314_s16, 256 }
 0xba0   : > { %p2663_p0 = scmp.ne.s32.totalorder %s3314_s16, %s2662_s19  ;;  %p2668_p7 = scmp.lt.u32.totalorder %s2662_s19, %s3314_s16 }
 0xba2   : > { %p2664_p3 = pnand %p2663_p0, %p2423_p11 }
 0xba4   : > { %p2665_p13 = pneg %p2664_p3 }
 0xba6   : > { %p2670_p1 = pnand %p2668_p7, %p2665_p13 }
 0xba8   : > { %2673 = shalt.err (!%p2670_p1)
}
 0xba9   : > { %s2735_s27 = smov 128   ;;  %s2736_s30 = smov 8  }
 0xbaa   : > { %2401 = dma.vmem_to_hbm [thread:$0]  (%p2423_p11), %s1910_s17, 256, %s3314_s16, [#allocation5], %s2735_s27, %s2735_s27, %s2736_s30  }
 0xbab   : > { %2703 = dma.done.wait (%p2423_p11), [#allocation5], 256  }
 0xbac   : > { %2705 = vsyncadd (%p2423_p11), [#allocation5], 4294967040 }
 0xbad PF: > { %s3315_s12 = sld [smem:[#allocation15_spill]]  ;;  %s3316_s30 = smov %s2712_s10 }
 0xbae   : > { %s3317_s10 = smov %s2716_s11  ;;  %s3318_s11 = smov %s2867_s24 }
 0xbb3   : > { %p19_p2 = scmp.ge.s32.totalorder %s3315_s12, 4  }
 0xbb5   :  { %21 = sbr.rel (!%p19_p2) target bundleno = 7 (0x7), region = 134 }
 0xbbc   :  { %1925 = vsyncpa [#allocation4], 1 }
 0xbbd   :  { %1927 = vsyncpa [#allocation4 + $0x1], 1 }
 0xbbe   :  { %1928 = vsyncpa [#allocation7], 1 }
 0xbbf   :  { %1929 = vsyncpa [#allocation5], 1 }
 0xbc0   :  { %1931 = vsyncpa [#allocation5 + $0x1], 1 }

</bundles_post_ra>
